<compile_context>
chip_gen: v7x
topology: tpu7x:2x2x1
jax: 0.10.0
libtpu: 0.0.40
codegen_flags: <defaults>
</compile_context>

<pallas_src>
import math
import functools

import jax
import jax.numpy as jnp
import numpy as np
from jax.experimental import pallas as pl
from jax.experimental.pallas import tpu as pltpu

EPS = 1e-6


def _layernorm_ref(x):
    # torch LayerNormalization: gamma*(x-mean)/(std+eps)+beta with gamma=beta=1
    # and torch-style unbiased std (ddof=1).
    d = x.shape[-1]
    mean = jnp.mean(x, axis=-1, keepdims=True)
    var = jnp.sum((x - mean) ** 2, axis=-1, keepdims=True) / (d - 1)
    return (x - mean) / (jnp.sqrt(var) + EPS) + 1.0


def _layernorm_kernel(x, *, approx):
    d = x.shape[-1]
    mean = jnp.mean(x, axis=-1, keepdims=True)
    var = jnp.sum((x - mean) ** 2, axis=-1, keepdims=True) / (d - 1)
    denom = jnp.sqrt(var) + EPS
    if approx:
        inv = pl.reciprocal(denom, approx=True)       # EUP slot (otherwise idle)
    else:
        inv = 1.0 / denom                             # one exact divide per row
    return (x - mean) * inv + 1.0


def encoder_block_kernel(x_ref, mask_ref, wqkv_ref, wo_ref, w1_ref, b1_ref,
                         w2_ref, b2_ref, out_ref, *,
                         num_head, block_b, seq_len, d_q, d_k, d_v, kv_blk,
                         fast_layout):
    H, Bt, S = num_head, block_b, seq_len
    M = Bt * S
    G = H * Bt
    dqh, dvh = d_q // H, d_v // H
    scale = 1.0 / math.sqrt(dqh)

    x = x_ref[...].astype(jnp.float32)                # (M, D)

    # ---------------- residual 1: x + MHA(LN(x)) ----------------
    n1 = _layernorm_kernel(x, approx=False).astype(jnp.bfloat16)

    # Fused Q|K|V projection: one wide bf16 MXU matmul, f32 accumulation.
    qkv = jnp.dot(n1, wqkv_ref[...], preferred_element_type=jnp.float32)
    q = qkv[:, :d_q] * scale                          # fold 1/sqrt(dqh) once
    k = qkv[:, d_q:d_q + d_k]
    v = qkv[:, d_q + d_k:]

    def to_heads(t, dh):
        # (M, H*dh) -> (H*Bt, S, dh)
        if fast_layout:
            # Single reshape + transpose (one relayout) instead of H sub-128
            # lane slices + stack.
            t4 = jnp.transpose(t.reshape(Bt, S, H, dh), (2, 0, 1, 3))
            return t4.reshape(G, S, dh).astype(jnp.bfloat16)
        parts = [t[:, h * dh:(h + 1) * dh].reshape(Bt, S, dh) for h in range(H)]
        return jnp.stack(parts, axis=0).reshape(G, S, dh).astype(jnp.bfloat16)

    qh = to_heads(q, dqh)                             # (G, S, dqh)
    kh = to_heads(k, dqh)
    vh = to_heads(v, dvh)

    keep = mask_ref[...].astype(jnp.int32) != 0       # (Bt, S, S) bool, from int8

    # ------- flash-style online softmax over KV blocks (no (S,S) f32 slab) ----
    # Static unrolled loop: kv block count is small (kv_blk <= 512).
    # TODO(synk): switch to lax.fori_loop + VMEM scratch K/V for very long S.
    n_kv = S // kv_blk
    m_i = jnp.full((G, S, 1), -jnp.inf, jnp.float32)
    l_i = jnp.zeros((G, S, 1), jnp.float32)
    acc = jnp.zeros((G, S, dvh), jnp.float32)
    for j in range(n_kv):
        k_blk = kh[:, j * kv_blk:(j + 1) * kv_blk, :]          # (G, kvb, dqh)
        v_blk = vh[:, j * kv_blk:(j + 1) * kv_blk, :]          # (G, kvb, dvh)
        s = jnp.einsum('gqd,gkd->gqk', qh, k_blk,
                       preferred_element_type=jnp.float32)      # (G, S, kvb)
        keep_blk = keep[:, :, j * kv_blk:(j + 1) * kv_blk]      # (Bt, S, kvb)
        s = jnp.where(keep_blk[None], s.reshape(H, Bt, S, kv_blk),
                      -1e9).reshape(G, S, kv_blk)
        m_new = jnp.maximum(m_i, jnp.max(s, axis=-1, keepdims=True))
        alpha = jnp.exp(m_i - m_new)
        p = jnp.exp(s - m_new)
        l_i = alpha * l_i + jnp.sum(p, axis=-1, keepdims=True)
        acc = alpha * acc + jnp.einsum('gqk,gkd->gqd', p.astype(jnp.bfloat16),
                                       v_blk, preferred_element_type=jnp.float32)
        m_i = m_new
    # TODO(synk): attention-score dropout skipped (eval mode => identity).

    ctx = acc * pl.reciprocal(l_i, approx=True)       # softmax divide on EUP

    # Merge heads back to the lane axis -> ONE K=d_v output projection.
    if fast_layout:
        ctx_cat = jnp.transpose(ctx.reshape(H, Bt, S, dvh),
                                (1, 2, 0, 3)).reshape(M, d_v)
    else:
        ctx4 = ctx.reshape(H, Bt, S, dvh)
        ctx_cat = jnp.concatenate([ctx4[h] for h in range(H)],
                                  axis=-1).reshape(M, d_v)
    ctx_cat = ctx_cat.astype(jnp.bfloat16)

    attn = jnp.dot(ctx_cat, wo_ref[...], preferred_element_type=jnp.float32)
    x1 = x + attn                                     # residual dropout = identity

    # ---------------- residual 2: x1 + FFN(LN(x1)) ----------------
    n2 = _layernorm_kernel(x1, approx=True).astype(jnp.bfloat16)
    # TODO(synk): for very large d_ff on v7x, chunk h1 along d_ff.
    h1 = jnp.dot(n2, w1_ref[...], preferred_element_type=jnp.float32) + b1_ref[...]
    h1 = jnp.maximum(h1, 0.0).astype(jnp.bfloat16)    # FFN dropout = identity
    ff = jnp.dot(h1, w2_ref[...], preferred_element_type=jnp.float32) + b2_ref[...]

    out_ref[...] = (x1 + ff).astype(out_ref.dtype)


def encoder_block(x, mask, params, num_head, *, block_b=None, kv_blk=None):
    B, S, D = x.shape
    W_q, W_k, W_v, W_o = params["W_q"], params["W_k"], params["W_v"], params["W_o"]
    d_q, d_k, d_v = W_q.shape[1], W_k.shape[1], W_v.shape[1]

    # bf16 matmul operands (f32 accumulation inside the kernel); fused QKV weight.
    wqkv = jnp.concatenate([W_q, W_k, W_v], axis=1).astype(jnp.bfloat16)
    wo = W_o.astype(jnp.bfloat16)
    w1 = params["W1t"].astype(jnp.bfloat16)
    w2 = params["W2t"].astype(jnp.bfloat16)
    b1 = params["b1"].astype(jnp.float32)
    b2 = params["b2"].astype(jnp.float32)

    # Flash KV tile: largest divisor of S not exceeding 512.
    if kv_blk is None:
        kv_blk = max(d for d in range(1, min(S, 512) + 1) if S % d == 0)

    # block_b: target >=256..512 matmul rows per grid step (MXU is 256-wide on
    # v6e/v7x), but cap at B//2 so grid_b >= 2 and both v7x TensorCores get work.
    if block_b is None:
        cap = max(1, B // 2)
        target_rows = 512
        cands = [d for d in range(1, B + 1)
                 if B % d == 0 and d <= cap and d * S <= max(target_rows, S)]
        block_b = max(cands) if cands else 1
    grid_b = B // block_b

    # Per-generation VMEM budget: ~75% of physical (96 MiB v5e/v6e, 48 MiB v7x).
    try:
        phys = pltpu.get_tpu_info().vmem_capacity_bytes
        vmem_limit = max(32 * 1024 * 1024,
                         min(100 * 1024 * 1024, int(phys) * 3 // 4))
    except Exception:
        vmem_limit = 64 * 1024 * 1024

    # Present x/out as a 2-D (B*S, D) slab: LN/QKV/FFN become single
    # (block_b*S, D) matmuls and stores are lane/sublane dense.
    x2d = x.reshape(B * S, D)
    mask_i8 = (mask != 0).astype(jnp.int8)            # 4x less mask DMA/VMEM

    def _const_index_map(nd):
        return lambda b: (0,) * nd

    def _call(optimized):
        kernel = functools.partial(
            encoder_block_kernel, num_head=num_head, block_b=block_b, seq_len=S,
            d_q=d_q, d_k=d_k, d_v=d_v, kv_blk=kv_blk, fast_layout=optimized)

        def _full(arr):
            kwargs = {}
            if optimized:
                # Constant index map -> single-buffer the resident weights.
                kwargs["pipeline_mode"] = pl.Buffered(1)
            return pl.BlockSpec(arr.shape, _const_index_map(arr.ndim), **kwargs)

        out2d = pl.pallas_call(
            kernel,
            out_shape=jax.ShapeDtypeStruct((B * S, D), x.dtype),
            grid=(grid_b,),
            in_specs=[
                pl.BlockSpec((block_b * S, D), lambda b: (b, 0)),     # x slab
                pl.BlockSpec((block_b, S, S), lambda b: (b, 0, 0)),   # int8 mask
                _full(wqkv), _full(wo), _full(w1), _full(b1), _full(w2), _full(b2),
            ],
            out_specs=pl.BlockSpec((block_b * S, D), lambda b: (b, 0)),
            compiler_params=pltpu.CompilerParams(
                dimension_semantics=("parallel",),
                vmem_limit_bytes=vmem_limit,
            ),
        )(x2d, mask_i8, wqkv, wo, w1, b1, w2, b2)
        return jax.block_until_ready(out2d)

    try:
        out2d = _call(True)
    except Exception:
        # Conservative fallback (per-head lane slices + stack, default double
        # buffering) in case the optimized layout path fails to lower on this
        # Mosaic version — guarantees the kernel still runs.
        out2d = _call(False)

    return out2d.reshape(B, S, D)


def encoder_block_reference(x, mask, params, num_head):
    """Pure-JAX reference for the PyTorch forward (eval mode).

    Mirrors the torch module structure: unbiased-std LN with gamma=beta=1,
    per-head 1/sqrt(dqh) scaling, masked_fill(-1e9), softmax, concat-heads @
    W_o, Linear-ReLU-Linear FFN.  Matmul operands are cast to bf16 with f32
    accumulation, mirroring the kernel's MXU precision strategy.
    """
    f32, bf16 = jnp.float32, jnp.bfloat16
    B, S, D = x.shape
    H = num_head
    W_q = params["W_q"].astype(bf16)
    W_k = params["W_k"].astype(bf16)
    W_v = params["W_v"].astype(bf16)
    W_o = params["W_o"].astype(bf16)
    W1 = params["W1t"].astype(bf16)
    W2 = params["W2t"].astype(bf16)
    b1 = params["b1"].astype(f32)
    b2 = params["b2"].astype(f32)

    n1 = _layernorm_ref(x).astype(bf16)
    q = jnp.matmul(n1, W_q, preferred_element_type=f32)
    k = jnp.matmul(n1, W_k, preferred_element_type=f32)
    v = jnp.matmul(n1, W_v, preferred_element_type=f32)
    d_q, d_v = q.shape[-1], v.shape[-1]
    dqh, dvh = d_q // H, d_v // H
    scale = 1.0 / math.sqrt(dqh)

    q = (q * scale).reshape(B, S, H, dqh).transpose(0, 2, 1, 3).astype(bf16)
    k = k.reshape(B, S, H, dqh).transpose(0, 2, 1, 3).astype(bf16)
    v = v.reshape(B, S, H, dvh).transpose(0, 2, 1, 3).astype(bf16)

    scores = jnp.matmul(q, jnp.swapaxes(k, -2, -1), preferred_element_type=f32)
    scores = jnp.where(mask[:, None, :, :] == 0, -1e9, scores)
    scores = scores - jnp.max(scores, axis=-1, keepdims=True)
    p = jnp.exp(scores)
    p = (p / jnp.sum(p, axis=-1, keepdims=True)).astype(bf16)

    a = jnp.matmul(p, v, preferred_element_type=f32)
    a = a.transpose(0, 2, 1, 3).reshape(B, S, d_v).astype(bf16)
    x1 = x + jnp.matmul(a, W_o, preferred_element_type=f32)

    n2 = _layernorm_ref(x1).astype(bf16)
    h1 = jnp.maximum(jnp.matmul(n2, W1, preferred_element_type=f32) + b1[0], 0.0)
    ff = jnp.matmul(h1.astype(bf16), W2, preferred_element_type=f32) + b2[0]
    return x1 + ff


if __name__ == "__main__":
    B, S = 2, 8
    d_model, d_q, d_k, d_v = 32, 32, 32, 32
    d_ff, num_head = 64, 4

    key = jax.random.PRNGKey(0)
    ks = jax.random.split(key, 12)

    # MultiHeadAttention parameters: torch.rand -> U[0, 1)
    W_q = jax.random.uniform(ks[0], (d_model, d_q), jnp.float32)
    W_k = jax.random.uniform(ks[1], (d_model, d_k), jnp.float32)
    W_v = jax.random.uniform(ks[2], (d_model, d_v), jnp.float32)
    W_o = jax.random.uniform(ks[3], (d_v, d_model), jnp.float32)

    # FeedForward nn.Linear parameters: U(-1/sqrt(fan_in), 1/sqrt(fan_in))
    lim1 = 1.0 / math.sqrt(d_model)
    lim2 = 1.0 / math.sqrt(d_ff)
    W1 = jax.random.uniform(ks[4], (d_ff, d_model), jnp.float32, -lim1, lim1)
    b1 = jax.random.uniform(ks[5], (d_ff,), jnp.float32, -lim1, lim1)
    W2 = jax.random.uniform(ks[6], (d_model, d_ff), jnp.float32, -lim2, lim2)
    b2 = jax.random.uniform(ks[7], (d_model,), jnp.float32, -lim2, lim2)

    params = dict(W_q=W_q, W_k=W_k, W_v=W_v, W_o=W_o,
                  W1t=W1.T, b1=b1.reshape(1, d_ff),
                  W2t=W2.T, b2=b2.reshape(1, d_model))

    x = jax.random.normal(ks[8], (B, S, d_model), jnp.float32)
    mask = (jax.random.uniform(ks[9], (B, S, S)) > 0.2).astype(jnp.float32)

    out = jax.block_until_ready(encoder_block(x, mask, params, num_head))
    ref = jax.block_until_ready(encoder_block_reference(x, mask, params, num_head))

    np.testing.assert_allclose(np.asarray(out), np.asarray(ref),
                               rtol=2e-2, atol=1e-2)

    print("KERNEL_OK")
</pallas_src>

<mosaic_0001>
module attributes {stable_mosaic.version = 11 : i64} {
  func.func @encoder_block_kernel(%arg0: i32, %arg1: memref<8x32xf32, #tpu.memory_space<vmem>>, %arg2: memref<1x8x8xi8, #tpu.memory_space<vmem>>, %arg3: memref<32x96xbf16, #tpu.memory_space<vmem>>, %arg4: memref<32x32xbf16, #tpu.memory_space<vmem>>, %arg5: memref<32x64xbf16, #tpu.memory_space<vmem>>, %arg6: memref<1x64xf32, #tpu.memory_space<vmem>>, %arg7: memref<64x32xbf16, #tpu.memory_space<vmem>>, %arg8: memref<1x32xf32, #tpu.memory_space<vmem>>, %arg9: memref<8x32xf32, #tpu.memory_space<vmem>>) attributes {dimension_semantics = [#tpu.dimension_semantics<parallel>], iteration_bounds = array<i64: 2>, scalar_prefetch = 0 : i64, scratch_operands = 0 : i64, tpu.core_type = #tpu.core_type<tc>, window_params = [{transform_indices = @transform_0, window_bounds = array<i64: 8, 32>}, {transform_indices = @transform_1, window_bounds = array<i64: 1, 8, 8>}, {pipeline_mode = #tpu.pipeline_mode<synchronous>, transform_indices = @transform_2, window_bounds = array<i64: 32, 96>}, {pipeline_mode = #tpu.pipeline_mode<synchronous>, transform_indices = @transform_3, window_bounds = array<i64: 32, 32>}, {pipeline_mode = #tpu.pipeline_mode<synchronous>, transform_indices = @transform_4, window_bounds = array<i64: 32, 64>}, {pipeline_mode = #tpu.pipeline_mode<synchronous>, transform_indices = @transform_5, window_bounds = array<i64: 1, 64>}, {pipeline_mode = #tpu.pipeline_mode<synchronous>, transform_indices = @transform_6, window_bounds = array<i64: 64, 32>}, {pipeline_mode = #tpu.pipeline_mode<synchronous>, transform_indices = @transform_7, window_bounds = array<i64: 1, 32>}, {transform_indices = @transform_8, window_bounds = array<i64: 8, 32>}]} {
    %c0 = arith.constant 0 : index
    %c0_0 = arith.constant 0 : index
    %0 = vector.load %arg1[%c0, %c0_0] : memref<8x32xf32, #tpu.memory_space<vmem>>, vector<8x32xf32>
    %cst = arith.constant dense<0.000000e+00> : vector<8xf32>
    %1 = vector.multi_reduction <add>, %0, %cst [1] : vector<8x32xf32> to vector<8xf32>
    %2 = vector.shape_cast %1 : vector<8xf32> to vector<8x1xf32>
    %cst_1 = arith.constant 3.200000e+01 : f32
    %3 = vector.broadcast %cst_1 : f32 to vector<8x1xf32>
    %4 = arith.divf %2, %3 : vector<8x1xf32>
    %5 = vector.broadcast %4 : vector<8x1xf32> to vector<8x32xf32>
    %6 = arith.subf %0, %5 : vector<8x32xf32>
    %7 = arith.mulf %6, %6 : vector<8x32xf32>
    %cst_2 = arith.constant dense<0.000000e+00> : vector<8xf32>
    %8 = vector.multi_reduction <add>, %7, %cst_2 [1] : vector<8x32xf32> to vector<8xf32>
    %9 = vector.shape_cast %8 : vector<8xf32> to vector<8x1xf32>
    %cst_3 = arith.constant 3.100000e+01 : f32
    %10 = vector.broadcast %cst_3 : f32 to vector<8x1xf32>
    %11 = arith.divf %9, %10 : vector<8x1xf32>
    %12 = math.sqrt %11 : vector<8x1xf32>
    %cst_4 = arith.constant 9.99999997E-7 : f32
    %13 = vector.broadcast %cst_4 : f32 to vector<8x1xf32>
    %14 = arith.addf %12, %13 : vector<8x1xf32>
    %cst_5 = arith.constant 1.000000e+00 : f32
    %15 = vector.broadcast %cst_5 : f32 to vector<8x1xf32>
    %16 = arith.divf %15, %14 : vector<8x1xf32>
    %17 = vector.broadcast %4 : vector<8x1xf32> to vector<8x32xf32>
    %18 = arith.subf %0, %17 : vector<8x32xf32>
    %19 = vector.broadcast %16 : vector<8x1xf32> to vector<8x32xf32>
    %20 = arith.mulf %18, %19 : vector<8x32xf32>
    %cst_6 = arith.constant 1.000000e+00 : f32
    %21 = vector.broadcast %cst_6 : f32 to vector<8x32xf32>
    %22 = arith.addf %20, %21 : vector<8x32xf32>
    %23 = arith.truncf %22 : vector<8x32xf32> to vector<8x32xbf16>
    %c0_7 = arith.constant 0 : index
    %c0_8 = arith.constant 0 : index
    %24 = vector.load %arg3[%c0_7, %c0_8] : memref<32x96xbf16, #tpu.memory_space<vmem>>, vector<32x96xbf16>
    %cst_9 = arith.constant dense<0.000000e+00> : vector<8x96xf32>
    %25 = tpu.matmul %23, %24, %cst_9 {dimension_numbers = #tpu.dot_dimension_numbers<[1], [0], [0], [1], [0, 0, 1, 1], [], []>} : vector<8x32xbf16>, vector<32x96xbf16>, vector<8x96xf32> -> vector<8x96xf32>
    %26 = vector.extract_strided_slice %25 {offsets = [0, 0], sizes = [8, 32], strides = [1, 1]} : vector<8x96xf32> to vector<8x32xf32>
    %cst_10 = arith.constant 0.353553385 : f32
    %27 = vector.broadcast %cst_10 : f32 to vector<8x32xf32>
    %28 = arith.mulf %26, %27 : vector<8x32xf32>
    %29 = vector.extract_strided_slice %25 {offsets = [0, 32], sizes = [8, 32], strides = [1, 1]} : vector<8x96xf32> to vector<8x32xf32>
    %30 = vector.extract_strided_slice %25 {offsets = [0, 64], sizes = [8, 32], strides = [1, 1]} : vector<8x96xf32> to vector<8x32xf32>
    %31 = vector.shape_cast %28 : vector<8x32xf32> to vector<1x8x4x8xf32>
    %32 = tpu.transpose %31, [2, 0, 1, 3] : vector<1x8x4x8xf32> -> vector<4x1x8x8xf32>
    %33 = vector.shape_cast %32 : vector<4x1x8x8xf32> to vector<4x8x8xf32>
    %34 = arith.truncf %33 : vector<4x8x8xf32> to vector<4x8x8xbf16>
    %35 = vector.shape_cast %29 : vector<8x32xf32> to vector<1x8x4x8xf32>
    %36 = tpu.transpose %35, [2, 0, 1, 3] : vector<1x8x4x8xf32> -> vector<4x1x8x8xf32>
    %37 = vector.shape_cast %36 : vector<4x1x8x8xf32> to vector<4x8x8xf32>
    %38 = arith.truncf %37 : vector<4x8x8xf32> to vector<4x8x8xbf16>
    %39 = vector.shape_cast %30 : vector<8x32xf32> to vector<1x8x4x8xf32>
    %40 = tpu.transpose %39, [2, 0, 1, 3] : vector<1x8x4x8xf32> -> vector<4x1x8x8xf32>
    %41 = vector.shape_cast %40 : vector<4x1x8x8xf32> to vector<4x8x8xf32>
    %42 = arith.truncf %41 : vector<4x8x8xf32> to vector<4x8x8xbf16>
    %c0_11 = arith.constant 0 : index
    %c0_12 = arith.constant 0 : index
    %c0_13 = arith.constant 0 : index
    %43 = vector.load %arg2[%c0_11, %c0_12, %c0_13] : memref<1x8x8xi8, #tpu.memory_space<vmem>>, vector<1x8x8xi8>
    %44 = arith.extsi %43 : vector<1x8x8xi8> to vector<1x8x8xi32>
    %c0_i32 = arith.constant 0 : i32
    %45 = vector.broadcast %c0_i32 : i32 to vector<1x8x8xi32>
    %46 = arith.cmpi ne, %44, %45 : vector<1x8x8xi32>
    %cst_14 = arith.constant 0xFF800000 : f32
    %47 = vector.broadcast %cst_14 : f32 to vector<4x8x1xf32>
    %cst_15 = arith.constant 0.000000e+00 : f32
    %48 = vector.broadcast %cst_15 : f32 to vector<4x8x1xf32>
    %cst_16 = arith.constant 0.000000e+00 : f32
    %49 = vector.broadcast %cst_16 : f32 to vector<4x8x8xf32>
    "tpu.trace_start"() <{level = 10 : i32, message = "gqd,gkd->gqk"}> : () -> ()
    %cst_17 = arith.constant dense<0.000000e+00> : vector<4x8x8xf32>
    %50 = tpu.matmul %34, %38, %cst_17 {dimension_numbers = #tpu.dot_dimension_numbers<[2], [2], [1], [1], [0, 0, 0, 1, 1, 1], [0], [0]>} : vector<4x8x8xbf16>, vector<4x8x8xbf16>, vector<4x8x8xf32> -> vector<4x8x8xf32>
    "tpu.trace_stop"() : () -> ()
    %51 = vector.shape_cast %46 : vector<1x8x8xi1> to vector<1x1x8x8xi1>
    %52 = vector.shape_cast %50 : vector<4x8x8xf32> to vector<4x1x8x8xf32>
    %cst_18 = arith.constant -1.000000e+09 : f32
    %53 = vector.shape_cast %51 : vector<1x1x8x8xi1> to vector<1x1x8x8xi1>
    %54 = vector.broadcast %53 : vector<1x1x8x8xi1> to vector<4x1x8x8xi1>
    %55 = vector.broadcast %cst_18 : f32 to vector<4x1x8x8xf32>
    %56 = arith.select %54, %52, %55 : vector<4x1x8x8xi1>, vector<4x1x8x8xf32>
    %57 = vector.shape_cast %56 : vector<4x1x8x8xf32> to vector<4x8x8xf32>
    %cst_19 = arith.constant dense<0xFF800000> : vector<4x8xf32>
    %58 = vector.multi_reduction <maximumf>, %57, %cst_19 [2] : vector<4x8x8xf32> to vector<4x8xf32>
    %59 = vector.shape_cast %58 : vector<4x8xf32> to vector<4x8x1xf32>
    %60 = arith.maximumf %47, %59 : vector<4x8x1xf32>
    %61 = arith.subf %47, %60 : vector<4x8x1xf32>
    %62 = math.exp %61 : vector<4x8x1xf32>
    %63 = vector.broadcast %60 : vector<4x8x1xf32> to vector<4x8x8xf32>
    %64 = arith.subf %57, %63 : vector<4x8x8xf32>
    %65 = math.exp %64 : vector<4x8x8xf32>
    %66 = arith.mulf %62, %48 : vector<4x8x1xf32>
    %cst_20 = arith.constant dense<0.000000e+00> : vector<4x8xf32>
    %67 = vector.multi_reduction <add>, %65, %cst_20 [2] : vector<4x8x8xf32> to vector<4x8xf32>
    %68 = vector.shape_cast %67 : vector<4x8xf32> to vector<4x8x1xf32>
    %69 = arith.addf %66, %68 : vector<4x8x1xf32>
    %70 = vector.broadcast %62 : vector<4x8x1xf32> to vector<4x8x8xf32>
    %71 = arith.mulf %70, %49 : vector<4x8x8xf32>
    %72 = arith.truncf %65 : vector<4x8x8xf32> to vector<4x8x8xbf16>
    "tpu.trace_start"() <{level = 10 : i32, message = "gqk,gkd->gqd"}> : () -> ()
    %cst_21 = arith.constant dense<0.000000e+00> : vector<4x8x8xf32>
    %73 = tpu.matmul %72, %42, %cst_21 {dimension_numbers = #tpu.dot_dimension_numbers<[2], [1], [1], [2], [0, 0, 0, 1, 1, 2], [0], [0]>} : vector<4x8x8xbf16>, vector<4x8x8xbf16>, vector<4x8x8xf32> -> vector<4x8x8xf32>
    "tpu.trace_stop"() : () -> ()
    %74 = arith.addf %71, %73 : vector<4x8x8xf32>
    %75 = tpu.reciprocal %69 {approx = true} : vector<4x8x1xf32> -> vector<4x8x1xf32>
    %76 = vector.broadcast %75 : vector<4x8x1xf32> to vector<4x8x8xf32>
    %77 = arith.mulf %74, %76 : vector<4x8x8xf32>
    %78 = vector.shape_cast %77 : vector<4x8x8xf32> to vector<4x1x8x8xf32>
    %79 = tpu.transpose %78, [1, 2, 0, 3] : vector<4x1x8x8xf32> -> vector<1x8x4x8xf32>
    %80 = vector.shape_cast %79 : vector<1x8x4x8xf32> to vector<8x32xf32>
    %81 = arith.truncf %80 : vector<8x32xf32> to vector<8x32xbf16>
    %c0_22 = arith.constant 0 : index
    %c0_23 = arith.constant 0 : index
    %82 = vector.load %arg4[%c0_22, %c0_23] : memref<32x32xbf16, #tpu.memory_space<vmem>>, vector<32x32xbf16>
    %cst_24 = arith.constant dense<0.000000e+00> : vector<8x32xf32>
    %83 = tpu.matmul %81, %82, %cst_24 {dimension_numbers = #tpu.dot_dimension_numbers<[1], [0], [0], [1], [0, 0, 1, 1], [], []>} : vector<8x32xbf16>, vector<32x32xbf16>, vector<8x32xf32> -> vector<8x32xf32>
    %84 = arith.addf %0, %83 : vector<8x32xf32>
    %cst_25 = arith.constant dense<0.000000e+00> : vector<8xf32>
    %85 = vector.multi_reduction <add>, %84, %cst_25 [1] : vector<8x32xf32> to vector<8xf32>
    %86 = vector.shape_cast %85 : vector<8xf32> to vector<8x1xf32>
    %cst_26 = arith.constant 3.200000e+01 : f32
    %87 = vector.broadcast %cst_26 : f32 to vector<8x1xf32>
    %88 = arith.divf %86, %87 : vector<8x1xf32>
    %89 = vector.broadcast %88 : vector<8x1xf32> to vector<8x32xf32>
    %90 = arith.subf %84, %89 : vector<8x32xf32>
    %91 = arith.mulf %90, %90 : vector<8x32xf32>
    %cst_27 = arith.constant dense<0.000000e+00> : vector<8xf32>
    %92 = vector.multi_reduction <add>, %91, %cst_27 [1] : vector<8x32xf32> to vector<8xf32>
    %93 = vector.shape_cast %92 : vector<8xf32> to vector<8x1xf32>
    %cst_28 = arith.constant 3.100000e+01 : f32
    %94 = vector.broadcast %cst_28 : f32 to vector<8x1xf32>
    %95 = arith.divf %93, %94 : vector<8x1xf32>
    %96 = math.sqrt %95 : vector<8x1xf32>
    %cst_29 = arith.constant 9.99999997E-7 : f32
    %97 = vector.broadcast %cst_29 : f32 to vector<8x1xf32>
    %98 = arith.addf %96, %97 : vector<8x1xf32>
    %99 = tpu.reciprocal %98 {approx = true} : vector<8x1xf32> -> vector<8x1xf32>
    %100 = vector.broadcast %88 : vector<8x1xf32> to vector<8x32xf32>
    %101 = arith.subf %84, %100 : vector<8x32xf32>
    %102 = vector.broadcast %99 : vector<8x1xf32> to vector<8x32xf32>
    %103 = arith.mulf %101, %102 : vector<8x32xf32>
    %cst_30 = arith.constant 1.000000e+00 : f32
    %104 = vector.broadcast %cst_30 : f32 to vector<8x32xf32>
    %105 = arith.addf %103, %104 : vector<8x32xf32>
    %106 = arith.truncf %105 : vector<8x32xf32> to vector<8x32xbf16>
    %c0_31 = arith.constant 0 : index
    %c0_32 = arith.constant 0 : index
    %107 = vector.load %arg5[%c0_31, %c0_32] : memref<32x64xbf16, #tpu.memory_space<vmem>>, vector<32x64xbf16>
    %cst_33 = arith.constant dense<0.000000e+00> : vector<8x64xf32>
    %108 = tpu.matmul %106, %107, %cst_33 {dimension_numbers = #tpu.dot_dimension_numbers<[1], [0], [0], [1], [0, 0, 1, 1], [], []>} : vector<8x32xbf16>, vector<32x64xbf16>, vector<8x64xf32> -> vector<8x64xf32>
    %c0_34 = arith.constant 0 : index
    %c0_35 = arith.constant 0 : index
    %109 = vector.load %arg6[%c0_34, %c0_35] : memref<1x64xf32, #tpu.memory_space<vmem>>, vector<1x64xf32>
    %110 = vector.broadcast %109 : vector<1x64xf32> to vector<8x64xf32>
    %111 = arith.addf %108, %110 : vector<8x64xf32>
    %cst_36 = arith.constant 0.000000e+00 : f32
    %112 = vector.broadcast %cst_36 : f32 to vector<8x64xf32>
    %113 = arith.maximumf %111, %112 : vector<8x64xf32>
    %114 = arith.truncf %113 : vector<8x64xf32> to vector<8x64xbf16>
    %c0_37 = arith.constant 0 : index
    %c0_38 = arith.constant 0 : index
    %115 = vector.load %arg7[%c0_37, %c0_38] : memref<64x32xbf16, #tpu.memory_space<vmem>>, vector<64x32xbf16>
    %cst_39 = arith.constant dense<0.000000e+00> : vector<8x32xf32>
    %116 = tpu.matmul %114, %115, %cst_39 {dimension_numbers = #tpu.dot_dimension_numbers<[1], [0], [0], [1], [0, 0, 1, 1], [], []>} : vector<8x64xbf16>, vector<64x32xbf16>, vector<8x32xf32> -> vector<8x32xf32>
    %c0_40 = arith.constant 0 : index
    %c0_41 = arith.constant 0 : index
    %117 = vector.load %arg8[%c0_40, %c0_41] : memref<1x32xf32, #tpu.memory_space<vmem>>, vector<1x32xf32>
    %118 = vector.broadcast %117 : vector<1x32xf32> to vector<8x32xf32>
    %119 = arith.addf %116, %118 : vector<8x32xf32>
    %120 = arith.addf %84, %119 : vector<8x32xf32>
    %c0_42 = arith.constant 0 : index
    %c0_43 = arith.constant 0 : index
    %121 = vector.load %arg9[%c0_42, %c0_43] : memref<8x32xf32, #tpu.memory_space<vmem>>, vector<8x32xf32>
    tpu.vector_store %arg9[%c0_42, %c0_43], %120 {strides = array<i32>} : memref<8x32xf32, #tpu.memory_space<vmem>>, vector<8x32xf32>,
    return
  }
  func.func @transform_0(%arg0: i32) -> (i32, i32) {
    %c0_i32 = arith.constant 0 : i32
    %c0_i32_0 = arith.constant 0 : i32
    return %arg0, %c0_i32 : i32, i32
  }
  func.func @transform_1(%arg0: i32) -> (i32, i32, i32) {
    %c0_i32 = arith.constant 0 : i32
    %c0_i32_0 = arith.constant 0 : i32
    %c0_i32_1 = arith.constant 0 : i32
    return %arg0, %c0_i32, %c0_i32_0 : i32, i32, i32
  }
  func.func @transform_2(%arg0: i32) -> (i32, i32) {
    %c0_i32 = arith.constant 0 : i32
    %c0_i32_0 = arith.constant 0 : i32
    %c0_i32_1 = arith.constant 0 : i32
    return %c0_i32, %c0_i32_0 : i32, i32
  }
  func.func @transform_3(%arg0: i32) -> (i32, i32) {
    %c0_i32 = arith.constant 0 : i32
    %c0_i32_0 = arith.constant 0 : i32
    %c0_i32_1 = arith.constant 0 : i32
    return %c0_i32, %c0_i32_0 : i32, i32
  }
  func.func @transform_4(%arg0: i32) -> (i32, i32) {
    %c0_i32 = arith.constant 0 : i32
    %c0_i32_0 = arith.constant 0 : i32
    %c0_i32_1 = arith.constant 0 : i32
    return %c0_i32, %c0_i32_0 : i32, i32
  }
  func.func @transform_5(%arg0: i32) -> (i32, i32) {
    %c0_i32 = arith.constant 0 : i32
    %c0_i32_0 = arith.constant 0 : i32
    %c0_i32_1 = arith.constant 0 : i32
    return %c0_i32, %c0_i32_0 : i32, i32
  }
  func.func @transform_6(%arg0: i32) -> (i32, i32) {
    %c0_i32 = arith.constant 0 : i32
    %c0_i32_0 = arith.constant 0 : i32
    %c0_i32_1 = arith.constant 0 : i32
    return %c0_i32, %c0_i32_0 : i32, i32
  }
  func.func @transform_7(%arg0: i32) -> (i32, i32) {
    %c0_i32 = arith.constant 0 : i32
    %c0_i32_0 = arith.constant 0 : i32
    %c0_i32_1 = arith.constant 0 : i32
    return %c0_i32, %c0_i32_0 : i32, i32
  }
  func.func @transform_8(%arg0: i32) -> (i32, i32) {
    %c0_i32 = arith.constant 0 : i32
    %c0_i32_0 = arith.constant 0 : i32
    return %arg0, %c0_i32 : i32, i32
  }
}

module attributes {stable_mosaic.version = 11 : i64} {
  func.func @encoder_block_kernel(%arg0: i32, %arg1: memref<8x32xf32, #tpu.memory_space<vmem>>, %arg2: memref<1x8x8xi8, #tpu.memory_space<vmem>>, %arg3: memref<32x96xbf16, #tpu.memory_space<vmem>>, %arg4: memref<32x32xbf16, #tpu.memory_space<vmem>>, %arg5: memref<32x64xbf16, #tpu.memory_space<vmem>>, %arg6: memref<1x64xf32, #tpu.memory_space<vmem>>, %arg7: memref<64x32xbf16, #tpu.memory_space<vmem>>, %arg8: memref<1x32xf32, #tpu.memory_space<vmem>>, %arg9: memref<8x32xf32, #tpu.memory_space<vmem>>) attributes {dimension_semantics = [#tpu.dimension_semantics<parallel>], iteration_bounds = array<i64: 2>, scalar_prefetch = 0 : i64, scratch_operands = 0 : i64, tpu.core_type = #tpu.core_type<tc>, window_params = [{transform_indices = @transform_0, window_bounds = array<i64: 8, 32>}, {transform_indices = @transform_1, window_bounds = array<i64: 1, 8, 8>}, {pipeline_mode = #tpu.pipeline_mode<synchronous>, transform_indices = @transform_2, window_bounds = array<i64: 32, 96>}, {pipeline_mode = #tpu.pipeline_mode<synchronous>, transform_indices = @transform_3, window_bounds = array<i64: 32, 32>}, {pipeline_mode = #tpu.pipeline_mode<synchronous>, transform_indices = @transform_4, window_bounds = array<i64: 32, 64>}, {pipeline_mode = #tpu.pipeline_mode<synchronous>, transform_indices = @transform_5, window_bounds = array<i64: 1, 64>}, {pipeline_mode = #tpu.pipeline_mode<synchronous>, transform_indices = @transform_6, window_bounds = array<i64: 64, 32>}, {pipeline_mode = #tpu.pipeline_mode<synchronous>, transform_indices = @transform_7, window_bounds = array<i64: 1, 32>}, {transform_indices = @transform_8, window_bounds = array<i64: 8, 32>}]} {
    %c0 = arith.constant 0 : index
    %c0_0 = arith.constant 0 : index
    %0 = vector.load %arg1[%c0, %c0_0] : memref<8x32xf32, #tpu.memory_space<vmem>>, vector<8x32xf32>
    %cst = arith.constant dense<0.000000e+00> : vector<8xf32>
    %1 = vector.multi_reduction <add>, %0, %cst [1] : vector<8x32xf32> to vector<8xf32>
    %2 = vector.shape_cast %1 : vector<8xf32> to vector<8x1xf32>
    %cst_1 = arith.constant 3.200000e+01 : f32
    %3 = vector.broadcast %cst_1 : f32 to vector<8x1xf32>
    %4 = arith.divf %2, %3 : vector<8x1xf32>
    %5 = vector.broadcast %4 : vector<8x1xf32> to vector<8x32xf32>
    %6 = arith.subf %0, %5 : vector<8x32xf32>
    %7 = arith.mulf %6, %6 : vector<8x32xf32>
    %cst_2 = arith.constant dense<0.000000e+00> : vector<8xf32>
    %8 = vector.multi_reduction <add>, %7, %cst_2 [1] : vector<8x32xf32> to vector<8xf32>
    %9 = vector.shape_cast %8 : vector<8xf32> to vector<8x1xf32>
    %cst_3 = arith.constant 3.100000e+01 : f32
    %10 = vector.broadcast %cst_3 : f32 to vector<8x1xf32>
    %11 = arith.divf %9, %10 : vector<8x1xf32>
    %12 = math.sqrt %11 : vector<8x1xf32>
    %cst_4 = arith.constant 9.99999997E-7 : f32
    %13 = vector.broadcast %cst_4 : f32 to vector<8x1xf32>
    %14 = arith.addf %12, %13 : vector<8x1xf32>
    %cst_5 = arith.constant 1.000000e+00 : f32
    %15 = vector.broadcast %cst_5 : f32 to vector<8x1xf32>
    %16 = arith.divf %15, %14 : vector<8x1xf32>
    %17 = vector.broadcast %4 : vector<8x1xf32> to vector<8x32xf32>
    %18 = arith.subf %0, %17 : vector<8x32xf32>
    %19 = vector.broadcast %16 : vector<8x1xf32> to vector<8x32xf32>
    %20 = arith.mulf %18, %19 : vector<8x32xf32>
    %cst_6 = arith.constant 1.000000e+00 : f32
    %21 = vector.broadcast %cst_6 : f32 to vector<8x32xf32>
    %22 = arith.addf %20, %21 : vector<8x32xf32>
    %23 = arith.truncf %22 : vector<8x32xf32> to vector<8x32xbf16>
    %c0_7 = arith.constant 0 : index
    %c0_8 = arith.constant 0 : index
    %24 = vector.load %arg3[%c0_7, %c0_8] : memref<32x96xbf16, #tpu.memory_space<vmem>>, vector<32x96xbf16>
    %cst_9 = arith.constant dense<0.000000e+00> : vector<8x96xf32>
    %25 = tpu.matmul %23, %24, %cst_9 {dimension_numbers = #tpu.dot_dimension_numbers<[1], [0], [0], [1], [0, 0, 1, 1], [], []>} : vector<8x32xbf16>, vector<32x96xbf16>, vector<8x96xf32> -> vector<8x96xf32>
    %26 = vector.extract_strided_slice %25 {offsets = [0, 0], sizes = [8, 32], strides = [1, 1]} : vector<8x96xf32> to vector<8x32xf32>
    %cst_10 = arith.constant 0.353553385 : f32
    %27 = vector.broadcast %cst_10 : f32 to vector<8x32xf32>
    %28 = arith.mulf %26, %27 : vector<8x32xf32>
    %29 = vector.extract_strided_slice %25 {offsets = [0, 32], sizes = [8, 32], strides = [1, 1]} : vector<8x96xf32> to vector<8x32xf32>
    %30 = vector.extract_strided_slice %25 {offsets = [0, 64], sizes = [8, 32], strides = [1, 1]} : vector<8x96xf32> to vector<8x32xf32>
    %31 = vector.extract_strided_slice %28 {offsets = [0, 0], sizes = [8, 8], strides = [1, 1]} : vector<8x32xf32> to vector<8x8xf32>
    %32 = vector.shape_cast %31 : vector<8x8xf32> to vector<1x8x8xf32>
    %33 = vector.extract_strided_slice %28 {offsets = [0, 8], sizes = [8, 8], strides = [1, 1]} : vector<8x32xf32> to vector<8x8xf32>
    %34 = vector.shape_cast %33 : vector<8x8xf32> to vector<1x8x8xf32>
    %35 = vector.extract_strided_slice %28 {offsets = [0, 16], sizes = [8, 8], strides = [1, 1]} : vector<8x32xf32> to vector<8x8xf32>
    %36 = vector.shape_cast %35 : vector<8x8xf32> to vector<1x8x8xf32>
    %37 = vector.extract_strided_slice %28 {offsets = [0, 24], sizes = [8, 8], strides = [1, 1]} : vector<8x32xf32> to vector<8x8xf32>
    %38 = vector.shape_cast %37 : vector<8x8xf32> to vector<1x8x8xf32>
    %39 = vector.shape_cast %32 : vector<1x8x8xf32> to vector<1x1x8x8xf32>
    %40 = vector.shape_cast %34 : vector<1x8x8xf32> to vector<1x1x8x8xf32>
    %41 = vector.shape_cast %36 : vector<1x8x8xf32> to vector<1x1x8x8xf32>
    %42 = vector.shape_cast %38 : vector<1x8x8xf32> to vector<1x1x8x8xf32>
    %43 = tpu.concatenate %39, %40, %41, %42 in 0 : vector<1x1x8x8xf32>, vector<1x1x8x8xf32>, vector<1x1x8x8xf32>, vector<1x1x8x8xf32> -> vector<4x1x8x8xf32>
    %44 = vector.shape_cast %43 : vector<4x1x8x8xf32> to vector<4x8x8xf32>
    %45 = arith.truncf %44 : vector<4x8x8xf32> to vector<4x8x8xbf16>
    %46 = vector.extract_strided_slice %29 {offsets = [0, 0], sizes = [8, 8], strides = [1, 1]} : vector<8x32xf32> to vector<8x8xf32>
    %47 = vector.shape_cast %46 : vector<8x8xf32> to vector<1x8x8xf32>
    %48 = vector.extract_strided_slice %29 {offsets = [0, 8], sizes = [8, 8], strides = [1, 1]} : vector<8x32xf32> to vector<8x8xf32>
    %49 = vector.shape_cast %48 : vector<8x8xf32> to vector<1x8x8xf32>
    %50 = vector.extract_strided_slice %29 {offsets = [0, 16], sizes = [8, 8], strides = [1, 1]} : vector<8x32xf32> to vector<8x8xf32>
    %51 = vector.shape_cast %50 : vector<8x8xf32> to vector<1x8x8xf32>
    %52 = vector.extract_strided_slice %29 {offsets = [0, 24], sizes = [8, 8], strides = [1, 1]} : vector<8x32xf32> to vector<8x8xf32>
    %53 = vector.shape_cast %52 : vector<8x8xf32> to vector<1x8x8xf32>
    %54 = vector.shape_cast %47 : vector<1x8x8xf32> to vector<1x1x8x8xf32>
    %55 = vector.shape_cast %49 : vector<1x8x8xf32> to vector<1x1x8x8xf32>
    %56 = vector.shape_cast %51 : vector<1x8x8xf32> to vector<1x1x8x8xf32>
    %57 = vector.shape_cast %53 : vector<1x8x8xf32> to vector<1x1x8x8xf32>
    %58 = tpu.concatenate %54, %55, %56, %57 in 0 : vector<1x1x8x8xf32>, vector<1x1x8x8xf32>, vector<1x1x8x8xf32>, vector<1x1x8x8xf32> -> vector<4x1x8x8xf32>
    %59 = vector.shape_cast %58 : vector<4x1x8x8xf32> to vector<4x8x8xf32>
    %60 = arith.truncf %59 : vector<4x8x8xf32> to vector<4x8x8xbf16>
    %61 = vector.extract_strided_slice %30 {offsets = [0, 0], sizes = [8, 8], strides = [1, 1]} : vector<8x32xf32> to vector<8x8xf32>
    %62 = vector.shape_cast %61 : vector<8x8xf32> to vector<1x8x8xf32>
    %63 = vector.extract_strided_slice %30 {offsets = [0, 8], sizes = [8, 8], strides = [1, 1]} : vector<8x32xf32> to vector<8x8xf32>
    %64 = vector.shape_cast %63 : vector<8x8xf32> to vector<1x8x8xf32>
    %65 = vector.extract_strided_slice %30 {offsets = [0, 16], sizes = [8, 8], strides = [1, 1]} : vector<8x32xf32> to vector<8x8xf32>
    %66 = vector.shape_cast %65 : vector<8x8xf32> to vector<1x8x8xf32>
    %67 = vector.extract_strided_slice %30 {offsets = [0, 24], sizes = [8, 8], strides = [1, 1]} : vector<8x32xf32> to vector<8x8xf32>
    %68 = vector.shape_cast %67 : vector<8x8xf32> to vector<1x8x8xf32>
    %69 = vector.shape_cast %62 : vector<1x8x8xf32> to vector<1x1x8x8xf32>
    %70 = vector.shape_cast %64 : vector<1x8x8xf32> to vector<1x1x8x8xf32>
    %71 = vector.shape_cast %66 : vector<1x8x8xf32> to vector<1x1x8x8xf32>
    %72 = vector.shape_cast %68 : vector<1x8x8xf32> to vector<1x1x8x8xf32>
    %73 = tpu.concatenate %69, %70, %71, %72 in 0 : vector<1x1x8x8xf32>, vector<1x1x8x8xf32>, vector<1x1x8x8xf32>, vector<1x1x8x8xf32> -> vector<4x1x8x8xf32>
    %74 = vector.shape_cast %73 : vector<4x1x8x8xf32> to vector<4x8x8xf32>
    %75 = arith.truncf %74 : vector<4x8x8xf32> to vector<4x8x8xbf16>
    %c0_11 = arith.constant 0 : index
    %c0_12 = arith.constant 0 : index
    %c0_13 = arith.constant 0 : index
    %76 = vector.load %arg2[%c0_11, %c0_12, %c0_13] : memref<1x8x8xi8, #tpu.memory_space<vmem>>, vector<1x8x8xi8>
    %77 = arith.extsi %76 : vector<1x8x8xi8> to vector<1x8x8xi32>
    %c0_i32 = arith.constant 0 : i32
    %78 = vector.broadcast %c0_i32 : i32 to vector<1x8x8xi32>
    %79 = arith.cmpi ne, %77, %78 : vector<1x8x8xi32>
    %cst_14 = arith.constant 0xFF800000 : f32
    %80 = vector.broadcast %cst_14 : f32 to vector<4x8x1xf32>
    %cst_15 = arith.constant 0.000000e+00 : f32
    %81 = vector.broadcast %cst_15 : f32 to vector<4x8x1xf32>
    %cst_16 = arith.constant 0.000000e+00 : f32
    %82 = vector.broadcast %cst_16 : f32 to vector<4x8x8xf32>
    "tpu.trace_start"() <{level = 10 : i32, message = "gqd,gkd->gqk"}> : () -> ()
    %cst_17 = arith.constant dense<0.000000e+00> : vector<4x8x8xf32>
    %83 = tpu.matmul %45, %60, %cst_17 {dimension_numbers = #tpu.dot_dimension_numbers<[2], [2], [1], [1], [0, 0, 0, 1, 1, 1], [0], [0]>} : vector<4x8x8xbf16>, vector<4x8x8xbf16>, vector<4x8x8xf32> -> vector<4x8x8xf32>
    "tpu.trace_stop"() : () -> ()
    %84 = vector.shape_cast %79 : vector<1x8x8xi1> to vector<1x1x8x8xi1>
    %85 = vector.shape_cast %83 : vector<4x8x8xf32> to vector<4x1x8x8xf32>
    %cst_18 = arith.constant -1.000000e+09 : f32
    %86 = vector.shape_cast %84 : vector<1x1x8x8xi1> to vector<1x1x8x8xi1>
    %87 = vector.broadcast %86 : vector<1x1x8x8xi1> to vector<4x1x8x8xi1>
    %88 = vector.broadcast %cst_18 : f32 to vector<4x1x8x8xf32>
    %89 = arith.select %87, %85, %88 : vector<4x1x8x8xi1>, vector<4x1x8x8xf32>
    %90 = vector.shape_cast %89 : vector<4x1x8x8xf32> to vector<4x8x8xf32>
    %cst_19 = arith.constant dense<0xFF800000> : vector<4x8xf32>
    %91 = vector.multi_reduction <maximumf>, %90, %cst_19 [2] : vector<4x8x8xf32> to vector<4x8xf32>
    %92 = vector.shape_cast %91 : vector<4x8xf32> to vector<4x8x1xf32>
    %93 = arith.maximumf %80, %92 : vector<4x8x1xf32>
    %94 = arith.subf %80, %93 : vector<4x8x1xf32>
    %95 = math.exp %94 : vector<4x8x1xf32>
    %96 = vector.broadcast %93 : vector<4x8x1xf32> to vector<4x8x8xf32>
    %97 = arith.subf %90, %96 : vector<4x8x8xf32>
    %98 = math.exp %97 : vector<4x8x8xf32>
    %99 = arith.mulf %95, %81 : vector<4x8x1xf32>
    %cst_20 = arith.constant dense<0.000000e+00> : vector<4x8xf32>
    %100 = vector.multi_reduction <add>, %98, %cst_20 [2] : vector<4x8x8xf32> to vector<4x8xf32>
    %101 = vector.shape_cast %100 : vector<4x8xf32> to vector<4x8x1xf32>
    %102 = arith.addf %99, %101 : vector<4x8x1xf32>
    %103 = vector.broadcast %95 : vector<4x8x1xf32> to vector<4x8x8xf32>
    %104 = arith.mulf %103, %82 : vector<4x8x8xf32>
    %105 = arith.truncf %98 : vector<4x8x8xf32> to vector<4x8x8xbf16>
    "tpu.trace_start"() <{level = 10 : i32, message = "gqk,gkd->gqd"}> : () -> ()
    %cst_21 = arith.constant dense<0.000000e+00> : vector<4x8x8xf32>
    %106 = tpu.matmul %105, %75, %cst_21 {dimension_numbers = #tpu.dot_dimension_numbers<[2], [1], [1], [2], [0, 0, 0, 1, 1, 2], [0], [0]>} : vector<4x8x8xbf16>, vector<4x8x8xbf16>, vector<4x8x8xf32> -> vector<4x8x8xf32>
    "tpu.trace_stop"() : () -> ()
    %107 = arith.addf %104, %106 : vector<4x8x8xf32>
    %108 = tpu.reciprocal %102 {approx = true} : vector<4x8x1xf32> -> vector<4x8x1xf32>
    %109 = vector.broadcast %108 : vector<4x8x1xf32> to vector<4x8x8xf32>
    %110 = arith.mulf %107, %109 : vector<4x8x8xf32>
    %111 = vector.shape_cast %110 : vector<4x8x8xf32> to vector<4x1x8x8xf32>
    %112 = vector.extract_strided_slice %111 {offsets = [0, 0, 0, 0], sizes = [1, 1, 8, 8], strides = [1, 1, 1, 1]} : vector<4x1x8x8xf32> to vector<1x1x8x8xf32>
    %113 = vector.shape_cast %112 : vector<1x1x8x8xf32> to vector<1x8x8xf32>
    %114 = vector.extract_strided_slice %111 {offsets = [1, 0, 0, 0], sizes = [1, 1, 8, 8], strides = [1, 1, 1, 1]} : vector<4x1x8x8xf32> to vector<1x1x8x8xf32>
    %115 = vector.shape_cast %114 : vector<1x1x8x8xf32> to vector<1x8x8xf32>
    %116 = vector.extract_strided_slice %111 {offsets = [2, 0, 0, 0], sizes = [1, 1, 8, 8], strides = [1, 1, 1, 1]} : vector<4x1x8x8xf32> to vector<1x1x8x8xf32>
    %117 = vector.shape_cast %116 : vector<1x1x8x8xf32> to vector<1x8x8xf32>
    %118 = vector.extract_strided_slice %111 {offsets = [3, 0, 0, 0], sizes = [1, 1, 8, 8], strides = [1, 1, 1, 1]} : vector<4x1x8x8xf32> to vector<1x1x8x8xf32>
    %119 = vector.shape_cast %118 : vector<1x1x8x8xf32> to vector<1x8x8xf32>
    %120 = tpu.concatenate %113, %115, %117, %119 in 2 : vector<1x8x8xf32>, vector<1x8x8xf32>, vector<1x8x8xf32>, vector<1x8x8xf32> -> vector<1x8x32xf32>
    %121 = vector.shape_cast %120 : vector<1x8x32xf32> to vector<8x32xf32>
    %122 = arith.truncf %121 : vector<8x32xf32> to vector<8x32xbf16>
    %c0_22 = arith.constant 0 : index
    %c0_23 = arith.constant 0 : index
    %123 = vector.load %arg4[%c0_22, %c0_23] : memref<32x32xbf16, #tpu.memory_space<vmem>>, vector<32x32xbf16>
    %cst_24 = arith.constant dense<0.000000e+00> : vector<8x32xf32>
    %124 = tpu.matmul %122, %123, %cst_24 {dimension_numbers = #tpu.dot_dimension_numbers<[1], [0], [0], [1], [0, 0, 1, 1], [], []>} : vector<8x32xbf16>, vector<32x32xbf16>, vector<8x32xf32> -> vector<8x32xf32>
    %125 = arith.addf %0, %124 : vector<8x32xf32>
    %cst_25 = arith.constant dense<0.000000e+00> : vector<8xf32>
    %126 = vector.multi_reduction <add>, %125, %cst_25 [1] : vector<8x32xf32> to vector<8xf32>
    %127 = vector.shape_cast %126 : vector<8xf32> to vector<8x1xf32>
    %cst_26 = arith.constant 3.200000e+01 : f32
    %128 = vector.broadcast %cst_26 : f32 to vector<8x1xf32>
    %129 = arith.divf %127, %128 : vector<8x1xf32>
    %130 = vector.broadcast %129 : vector<8x1xf32> to vector<8x32xf32>
    %131 = arith.subf %125, %130 : vector<8x32xf32>
    %132 = arith.mulf %131, %131 : vector<8x32xf32>
    %cst_27 = arith.constant dense<0.000000e+00> : vector<8xf32>
    %133 = vector.multi_reduction <add>, %132, %cst_27 [1] : vector<8x32xf32> to vector<8xf32>
    %134 = vector.shape_cast %133 : vector<8xf32> to vector<8x1xf32>
    %cst_28 = arith.constant 3.100000e+01 : f32
    %135 = vector.broadcast %cst_28 : f32 to vector<8x1xf32>
    %136 = arith.divf %134, %135 : vector<8x1xf32>
    %137 = math.sqrt %136 : vector<8x1xf32>
    %cst_29 = arith.constant 9.99999997E-7 : f32
    %138 = vector.broadcast %cst_29 : f32 to vector<8x1xf32>
    %139 = arith.addf %137, %138 : vector<8x1xf32>
    %140 = tpu.reciprocal %139 {approx = true} : vector<8x1xf32> -> vector<8x1xf32>
    %141 = vector.broadcast %129 : vector<8x1xf32> to vector<8x32xf32>
    %142 = arith.subf %125, %141 : vector<8x32xf32>
    %143 = vector.broadcast %140 : vector<8x1xf32> to vector<8x32xf32>
    %144 = arith.mulf %142, %143 : vector<8x32xf32>
    %cst_30 = arith.constant 1.000000e+00 : f32
    %145 = vector.broadcast %cst_30 : f32 to vector<8x32xf32>
    %146 = arith.addf %144, %145 : vector<8x32xf32>
    %147 = arith.truncf %146 : vector<8x32xf32> to vector<8x32xbf16>
    %c0_31 = arith.constant 0 : index
    %c0_32 = arith.constant 0 : index
    %148 = vector.load %arg5[%c0_31, %c0_32] : memref<32x64xbf16, #tpu.memory_space<vmem>>, vector<32x64xbf16>
    %cst_33 = arith.constant dense<0.000000e+00> : vector<8x64xf32>
    %149 = tpu.matmul %147, %148, %cst_33 {dimension_numbers = #tpu.dot_dimension_numbers<[1], [0], [0], [1], [0, 0, 1, 1], [], []>} : vector<8x32xbf16>, vector<32x64xbf16>, vector<8x64xf32> -> vector<8x64xf32>
    %c0_34 = arith.constant 0 : index
    %c0_35 = arith.constant 0 : index
    %150 = vector.load %arg6[%c0_34, %c0_35] : memref<1x64xf32, #tpu.memory_space<vmem>>, vector<1x64xf32>
    %151 = vector.broadcast %150 : vector<1x64xf32> to vector<8x64xf32>
    %152 = arith.addf %149, %151 : vector<8x64xf32>
    %cst_36 = arith.constant 0.000000e+00 : f32
    %153 = vector.broadcast %cst_36 : f32 to vector<8x64xf32>
    %154 = arith.maximumf %152, %153 : vector<8x64xf32>
    %155 = arith.truncf %154 : vector<8x64xf32> to vector<8x64xbf16>
    %c0_37 = arith.constant 0 : index
    %c0_38 = arith.constant 0 : index
    %156 = vector.load %arg7[%c0_37, %c0_38] : memref<64x32xbf16, #tpu.memory_space<vmem>>, vector<64x32xbf16>
    %cst_39 = arith.constant dense<0.000000e+00> : vector<8x32xf32>
    %157 = tpu.matmul %155, %156, %cst_39 {dimension_numbers = #tpu.dot_dimension_numbers<[1], [0], [0], [1], [0, 0, 1, 1], [], []>} : vector<8x64xbf16>, vector<64x32xbf16>, vector<8x32xf32> -> vector<8x32xf32>
    %c0_40 = arith.constant 0 : index
    %c0_41 = arith.constant 0 : index
    %158 = vector.load %arg8[%c0_40, %c0_41] : memref<1x32xf32, #tpu.memory_space<vmem>>, vector<1x32xf32>
    %159 = vector.broadcast %158 : vector<1x32xf32> to vector<8x32xf32>
    %160 = arith.addf %157, %159 : vector<8x32xf32>
    %161 = arith.addf %125, %160 : vector<8x32xf32>
    %c0_42 = arith.constant 0 : index
    %c0_43 = arith.constant 0 : index
    %162 = vector.load %arg9[%c0_42, %c0_43] : memref<8x32xf32, #tpu.memory_space<vmem>>, vector<8x32xf32>
    tpu.vector_store %arg9[%c0_42, %c0_43], %161 {strides = array<i32>} : memref<8x32xf32, #tpu.memory_space<vmem>>, vector<8x32xf32>,
    return
  }
  func.func @transform_0(%arg0: i32) -> (i32, i32) {
    %c0_i32 = arith.constant 0 : i32
    %c0_i32_0 = arith.constant 0 : i32
    return %arg0, %c0_i32 : i32, i32
  }
  func.func @transform_1(%arg0: i32) -> (i32, i32, i32) {
    %c0_i32 = arith.constant 0 : i32
    %c0_i32_0 = arith.constant 0 : i32
    %c0_i32_1 = arith.constant 0 : i32
    return %arg0, %c0_i32, %c0_i32_0 : i32, i32, i32
  }
  func.func @transform_2(%arg0: i32) -> (i32, i32) {
    %c0_i32 = arith.constant 0 : i32
    %c0_i32_0 = arith.constant 0 : i32
    %c0_i32_1 = arith.constant 0 : i32
    return %c0_i32, %c0_i32_0 : i32, i32
  }
  func.func @transform_3(%arg0: i32) -> (i32, i32) {
    %c0_i32 = arith.constant 0 : i32
    %c0_i32_0 = arith.constant 0 : i32
    %c0_i32_1 = arith.constant 0 : i32
    return %c0_i32, %c0_i32_0 : i32, i32
  }
  func.func @transform_4(%arg0: i32) -> (i32, i32) {
    %c0_i32 = arith.constant 0 : i32
    %c0_i32_0 = arith.constant 0 : i32
    %c0_i32_1 = arith.constant 0 : i32
    return %c0_i32, %c0_i32_0 : i32, i32
  }
  func.func @transform_5(%arg0: i32) -> (i32, i32) {
    %c0_i32 = arith.constant 0 : i32
    %c0_i32_0 = arith.constant 0 : i32
    %c0_i32_1 = arith.constant 0 : i32
    return %c0_i32, %c0_i32_0 : i32, i32
  }
  func.func @transform_6(%arg0: i32) -> (i32, i32) {
    %c0_i32 = arith.constant 0 : i32
    %c0_i32_0 = arith.constant 0 : i32
    %c0_i32_1 = arith.constant 0 : i32
    return %c0_i32, %c0_i32_0 : i32, i32
  }
  func.func @transform_7(%arg0: i32) -> (i32, i32) {
    %c0_i32 = arith.constant 0 : i32
    %c0_i32_0 = arith.constant 0 : i32
    %c0_i32_1 = arith.constant 0 : i32
    return %c0_i32, %c0_i32_0 : i32, i32
  }
  func.func @transform_8(%arg0: i32) -> (i32, i32) {
    %c0_i32 = arith.constant 0 : i32
    %c0_i32_0 = arith.constant 0 : i32
    return %arg0, %c0_i32 : i32, i32
  }
}

</mosaic_0001>

<bundles_post_ra>
// kernel: tpu_custom_call.1
= control target key start
LH: loop header
LB: loop body
LE: loop exit
PB: predicated region body
PF: predicated region fallthrough
CT: control target
= control target key end

     0   :  { %s3304_s0 = inlined_call_operand.hbm [shape: f32[16,32], index: 0, kind: input, shape index: {}]   ;;  %s3305_s1 = inlined_call_operand.hbm [shape: s8[2,8,8], index: 1, kind: input, shape index: {}]   ;;  %s3306_s2 = inlined_call_operand.hbm [shape: bf16[32,96], index: 2, kind: input, shape index: {}]   ;;  %s3307_s3 = inlined_call_operand.hbm [shape: bf16[32,32], index: 3, kind: input, shape index: {}]   ;;  %s3308_s4 = inlined_call_operand.hbm [shape: bf16[32,64], index: 4, kind: input, shape index: {}]   ;;  %s3309_s5 = inlined_call_operand.hbm [shape: f32[1,64], index: 5, kind: input, shape index: {}]   ;;  %s3310_s6 = inlined_call_operand.hbm [shape: bf16[64,32], index: 6, kind: input, shape index: {}]   ;;  %s3311_s7 = inlined_call_operand.hbm [shape: f32[1,32], index: 7, kind: input, shape index: {}]   ;;  %s3312_s8 = inlined_call_operand.hbm [shape: f32[16,32], index: 8, kind: output, shape index: {}]  }
   0x1   :  { %3319 = sst [smem:[#allocation24_spill]] %s3304_s0 }
   0x2   :  { %3320 = sst [smem:[#allocation25_spill]] %s3306_s2 }
   0x3   :  { %3321 = sst [smem:[#allocation26_spill]] %s3307_s3 }
   0x4   :  { %3322 = sst [smem:[#allocation27_spill]] %s3308_s4 }
   0x5   :  { %13 = vsyncpa [#allocation3], 0 }
   0x6   :  { %15 = vsyncpa [#allocation3 + $0x1], 0 }
   0x7   :  { %16 = vsyncpa [#allocation6], 0 }
   0x8   :  { %18 = vsyncpa [#allocation6 + $0x1], 0 }
   0x9   :  { %19 = vsyncpa [#allocation9], 0 }
   0xa   :  { %20 = vsyncpa [#allocation12], 0 }
   0xb   :  { %21 = vsyncpa [#allocation15], 0 }
   0xc   :  { %22 = vsyncpa [#allocation4], 0 }
   0xd   :  { %24 = vsyncpa [#allocation4 + $0x1], 0  ;;  %s2719_s27 = smov 0   ;;  %s2721_s28 = smov 0  }
   0xe   :  { %s2723_s29 = smov 0   ;;  %s2725_s30 = smov 0  }
   0xf LB: > { %s2651_s9 = smov [#allocation7]   ;;  %s2740_s11 = sadd.s32 4294967295, %s2649_s30   ;;  %s2649_s30 = sphi %s2725_s30, %s3356_s30   ;;  %s2645_s29 = sphi %s2723_s29, %s3355_s29   ;;  %s2641_s28 = sphi %s2721_s28, %s3354_s28   ;;  %s2637_s27 = sphi %s2719_s27, %s3353_s27  }
  0x10   : > { %s251_s10 = sshll.u32 %s2651_s9, 4  ;;  %p1995_p0 = scmp.ge.s32.totalorder %s2649_s30, 1  ;;  %s2745_s10 = int_to_ptr.vmem [resolvable:$true] %s251_s10 }
  0x11   : > { %p3315_p1 = scmp.eq.s32.totalorder %s2740_s11, 0  ;;  %p239_p2 = scmp.lt.s32.totalorder %s2649_s30, 3 }
  0x12   : > { %s2652_s13 = smov [#allocation8]   ;;  %s2653_s16 = smov [#allocation11]  }
  0x13   : > { %p2747_p3 = pnand %p1995_p0, %p239_p2  ;;  %s264_s14 = sshll.u32 %s2652_s13, 4  ;;  %s2760_s14 = int_to_ptr.vmem [resolvable:$true] %s264_s14 }
  0x14   : > { %s291_s17 = sshll.u32 %s2653_s16, 4  ;;  %s3325_s2 = sld [smem:[#allocation25_spill]]  ;;  %s2762_s17 = int_to_ptr.vmem [resolvable:$true] %s291_s17 }
  0x15   : > { %s3323_s12 = scalar_select %p2747_p3, 1, 0 }
  0x16   : > { %p2197_p5 = pneg %p2747_p3 }
  0x18   : > { %p2756_p6 = pnand %p2197_p5, %p3315_p1 }
  0x1a   : > { %s2335_s20 = scalar_lea.hbm %s3325_s2, 256  ;;  %p2772_p8 = pneg %p2756_p6 }
  0x1b   : > { %p2336_p7 = scmp.ne.s32.totalorder %s3325_s2, %s2335_s20  ;;  %p2342_p11 = scmp.lt.u32.totalorder %s2335_s20, %s3325_s2 }
  0x1d   : > { %p2338_p9 = pnand %p2772_p8, %p2336_p7 }
  0x1f   : > { %p2339_p10 = pneg %p2338_p9 }
  0x21   : > { %p2344_p12 = pnand %p2342_p11, %p2339_p10 }
  0x23   : > { %2347 = shalt.err (!%p2344_p12)
}
  0x24   : > { %s2348_s26 = scalar_lea.vmem %s2745_s10, 256  ;;  %p2356_p5 = scmp.lt.s32.totalorder %s2745_s10, %s2745_s10 }
  0x25   : > { %p2349_p13 = scmp.ne.s32.totalorder %s2745_s10, %s2348_s26  ;;  %p2357_p4 = scmp.lt.s32.totalorder %s2348_s26, %s2348_s26 }
  0x27   : > { %p2351_p0 = pnand %p2349_p13, %p2772_p8  ;;  %p2358_p7 = por %p2357_p4, %p2356_p5 }
  0x29   : > { %p2352_p2 = pneg %p2351_p0 }
  0x2b   : > { %p2359_p9 = pnand %p2358_p7, %p2352_p2 }
  0x2d   : > { %2362 = shalt.err (!%p2359_p9)
}
  0x2e   : > { %s3313_s9 = smov 64   ;;  %s2655_s13 = smov 4  }
  0x2f   : > { %2200 = dma.hbm_to_vmem [thread:$0]  (!%p2756_p6), %s3325_s2, 256, %s2745_s10, [#allocation6], %s3313_s9, %s3313_s9, %s2655_s13  }
  0x30   : > { %s3327_s3 = sld [smem:[#allocation26_spill]] }
  0x36   : > { %s2363_s21 = scalar_lea.hbm %s3327_s3, 256 }
  0x37   : > { %p2364_p4 = scmp.ne.s32.totalorder %s3327_s3, %s2363_s21  ;;  %p2370_p12 = scmp.lt.u32.totalorder %s2363_s21, %s3327_s3 }
  0x39   : > { %p2366_p10 = pnand %p2364_p4, %p2772_p8 }
  0x3b   : > { %p2367_p11 = pneg %p2366_p10 }
  0x3d   : > { %p2372_p13 = pnand %p2370_p12, %p2367_p11 }
  0x3f   : > { %2375 = shalt.err (!%p2372_p13)
}
  0x40   : > { %s2376_s10 = scalar_lea.vmem %s2760_s14, 256  ;;  %p2384_p7 = scmp.lt.s32.totalorder %s2760_s14, %s2760_s14 }
  0x41   : > { %p2377_p0 = scmp.ne.s32.totalorder %s2760_s14, %s2376_s10  ;;  %p2385_p9 = scmp.lt.s32.totalorder %s2376_s10, %s2376_s10 }
  0x43   : > { %p2379_p2 = pnand %p2377_p0, %p2772_p8  ;;  %p2386_p4 = por %p2385_p9, %p2384_p7 }
  0x45   : > { %p2380_p5 = pneg %p2379_p2 }
  0x47   : > { %p2387_p10 = pnand %p2386_p4, %p2380_p5 }
  0x49   : > { %2390 = shalt.err (!%p2387_p10)
}
  0x4a   : > { %2203 = dma.hbm_to_vmem [thread:$0]  (!%p2756_p6), %s3327_s3, 256, %s2760_s14, [#allocation9], %s3313_s9, %s3313_s9, %s2655_s13  }
  0x4b   : > { %s2391_s21 = scalar_lea.hbm %s3309_s5, 16 }
  0x4c   : > { %p2392_p11 = scmp.ne.s32.totalorder %s3309_s5, %s2391_s21  ;;  %p2398_p0 = scmp.lt.u32.totalorder %s2391_s21, %s3309_s5 }
  0x4e   : > { %p2394_p12 = pnand %p2392_p11, %p2772_p8 }
  0x50   : > { %p2395_p13 = pneg %p2394_p12 }
  0x52   : > { %p2400_p2 = pnand %p2398_p0, %p2395_p13 }
  0x54   : > { %2403 = shalt.err (!%p2400_p2)
}
  0x55   : > { %s2404_s14 = scalar_lea.vmem %s2762_s17, 16  ;;  %s2411_s10 = scalar_lea.vmem %s2762_s17, 32 }
  0x56   : > { %p2405_p5 = scmp.ne.s32.totalorder %s2762_s17, %s2404_s14  ;;  %p2412_p4 = scmp.lt.s32.totalorder %s2762_s17, %s2762_s17 }
  0x57   : > { %p2413_p10 = scmp.lt.s32.totalorder %s2411_s10, %s2404_s14 }
  0x58   : > { %p2407_p7 = pnand %p2405_p5, %p2772_p8 }
  0x59   : > { %p2414_p11 = por %p2413_p10, %p2412_p4 }
  0x5a   : > { %p2408_p9 = pneg %p2407_p7 }
  0x5c   : > { %p2415_p12 = pnand %p2414_p11, %p2408_p9 }
  0x5e   : > { %2418 = shalt.err (!%p2415_p12)
}
  0x5f   : > { %2209 = dma.hbm_to_vmem [thread:$0]  (!%p2756_p6), %s3309_s5, 16, %s2762_s17, [#allocation12]  }
  0x60   : > { %s2656_s19 = smov [#allocation10]   ;;  %s2657_s21 = smov [#allocation13]  }
  0x61   : > { %s277_s20 = sshll.u32 %s2656_s19, 4  ;;  %s301_s22 = sshll.u32 %s2657_s21, 4  ;;  %s278_s20 = int_to_ptr.vmem [resolvable:$true] %s277_s20  ;;  %s302_s22 = int_to_ptr.vmem [resolvable:$true] %s301_s22 }
  0x62   : > { %s3328_s4 = sld [smem:[#allocation27_spill]] }
  0x68   : > { %s2419_s26 = scalar_lea.hbm %s3328_s4, 256 }
  0x69   : > { %p2420_p13 = scmp.ne.s32.totalorder %s3328_s4, %s2419_s26  ;;  %p2426_p5 = scmp.lt.u32.totalorder %s2419_s26, %s3328_s4 }
  0x6b   : > { %p2422_p0 = pnand %p2420_p13, %p2772_p8 }
  0x6d   : > { %p2423_p2 = pneg %p2422_p0 }
  0x6f   : > { %p2428_p7 = pnand %p2426_p5, %p2423_p2 }
  0x71   : > { %2431 = shalt.err (!%p2428_p7)
}
  0x72   : > { %s2432_s17 = scalar_lea.vmem %s278_s20, 256  ;;  %p2440_p11 = scmp.lt.s32.totalorder %s278_s20, %s278_s20 }
  0x73   : > { %p2433_p9 = scmp.ne.s32.totalorder %s278_s20, %s2432_s17  ;;  %p2441_p12 = scmp.lt.s32.totalorder %s2432_s17, %s2432_s17 }
  0x75   : > { %p2435_p4 = pnand %p2433_p9, %p2772_p8  ;;  %p2442_p1 = por %p2441_p12, %p2440_p11 }
  0x77   : > { %p2436_p10 = pneg %p2435_p4 }
  0x79   : > { %p2443_p3 = pnand %p2442_p1, %p2436_p10 }
  0x7b   : > { %2446 = shalt.err (!%p2443_p3)
}
  0x7c   : > { %s3329_s18 = smov 64   ;;  %s2447_s25 = scalar_lea.hbm %s3310_s6, 512 }
  0x7d   : > { %2206 = dma.hbm_to_vmem [thread:$0]  (!%p2756_p6), %s3328_s4, 256, %s278_s20, [#allocation9], %s3329_s18, %s3329_s18, %s2655_s13  }
  0x7e   : > { %p2448_p1 = scmp.ne.s32.totalorder %s3310_s6, %s2447_s25  ;;  %p2454_p0 = scmp.lt.u32.totalorder %s2447_s25, %s3310_s6 }
  0x80   : > { %p2450_p3 = pnand %p2448_p1, %p2772_p8 }
  0x82   : > { %p2451_p13 = pneg %p2450_p3 }
  0x84   : > { %p2456_p2 = pnand %p2454_p0, %p2451_p13 }
  0x86   : > { %2459 = shalt.err (!%p2456_p2)
}
  0x87   : > { %s2460_s17 = scalar_lea.vmem %s302_s22, 512  ;;  %p2468_p4 = scmp.lt.s32.totalorder %s302_s22, %s302_s22 }
  0x88   : > { %p2461_p5 = scmp.ne.s32.totalorder %s302_s22, %s2460_s17  ;;  %p2469_p10 = scmp.lt.s32.totalorder %s2460_s17, %s2460_s17 }
  0x8a   : > { %p2463_p7 = pnand %p2461_p5, %p2772_p8  ;;  %p2470_p11 = por %p2469_p10, %p2468_p4 }
  0x8c   : > { %p2464_p9 = pneg %p2463_p7 }
  0x8e   : > { %p2471_p12 = pnand %p2470_p11, %p2464_p9 }
  0x90   : > { %2474 = shalt.err (!%p2471_p12)
}
  0x91   : > { %2212 = dma.hbm_to_vmem [thread:$0]  (!%p2756_p6), %s3310_s6, 512, %s302_s22, [#allocation12], %s3329_s18, %s3329_s18, %s2655_s13  }
  0x92   : > { %s2658_s19 = smov [#allocation14]   ;;  %s2475_s26 = scalar_lea.hbm %s3311_s7, 16 }
  0x93   : > { %s315_s21 = sshll.u32 %s2658_s19, 4  ;;  %p2476_p1 = scmp.ne.s32.totalorder %s3311_s7, %s2475_s26  ;;  %s316_s21 = int_to_ptr.vmem [resolvable:$true] %s315_s21 }
  0x94   : > { %p2482_p0 = scmp.lt.u32.totalorder %s2475_s26, %s3311_s7 }
  0x95   : > { %p2478_p3 = pnand %p2476_p1, %p2772_p8 }
  0x97   : > { %p2479_p13 = pneg %p2478_p3 }
  0x99   : > { %p2484_p2 = pnand %p2482_p0, %p2479_p13 }
  0x9b   : > { %2487 = shalt.err (!%p2484_p2)
}
  0x9c   : > { %s2488_s13 = scalar_lea.vmem %s316_s21, 16  ;;  %s2495_s22 = scalar_lea.vmem %s316_s21, 32 }
  0x9d   : > { %p2489_p5 = scmp.ne.s32.totalorder %s316_s21, %s2488_s13  ;;  %p2496_p4 = scmp.lt.s32.totalorder %s316_s21, %s316_s21 }
  0x9e   : > { %p2497_p10 = scmp.lt.s32.totalorder %s2495_s22, %s2488_s13 }
  0x9f   : > { %p2491_p7 = pnand %p2489_p5, %p2772_p8 }
  0xa0   : > { %p2498_p11 = por %p2497_p10, %p2496_p4 }
  0xa1   : > { %p2492_p9 = pneg %p2491_p7 }
  0xa3   : > { %p2499_p12 = pnand %p2498_p11, %p2492_p9 }
  0xa5   : > { %2502 = shalt.err (!%p2499_p12)
}
  0xa6   : > { %2215 = dma.hbm_to_vmem [thread:$0]  (!%p2756_p6), %s3311_s7, 16, %s316_s21, [#allocation15]  }
  0xa7   : > { %s1994_s23 = sadd.s32 4294967294, %s2649_s30   ;;  %s2908_s15 = sadd.s32 1, %s2649_s30  }
  0xa8   : > { %s34_s9 = ssub.s32 %s2649_s30, %s2908_s15  ;;  %s37_s19 = sadd.s32 1, %s2645_s29 }
  0xa9   : > { %p35_p8 = scmp.eq.s32.totalorder %s34_s9, 0  ;;  %p44_p1 = scmp.ne.s32.totalorder %s2645_s29, %s2641_s28 }
  0xaa   : > { %p45_p3 = scmp.eq.s32.totalorder %s2649_s30, 0  ;;  %p50_p13 = scmp.ne.s32.totalorder %s2641_s28, %s2637_s27 }
  0xab   : > { %s2919_s24 = scalar_select %p35_p8, %s2645_s29, %s37_s19  }
  0xac   : > { %p2921_p0 = por %p45_p3, %p44_p1  ;;  %p3331_p2 = scmp.eq.s32.totalorder %s2740_s11, 0 }
  0xad   : > { %p226_p5 = scmp.eq.s32.totalorder %s2740_s11, 1  ;;  %p232_p7 = scmp.eq.s32.totalorder %s1994_s23, 1 }
  0xae   : > { %p2927_p6 = por %p3331_p2, %p50_p13  ;;  %p2233_p9 = scmp.lt.s32.totalorder %s2649_s30, 2 }
  0xaf   : > { %s2934_s26 = sand.u32 1, %s2645_s29   ;;  %p2936_p4 = por %p226_p5, %p44_p1 }
  0xb0   : > { %s3332_s21 = scalar_select %p2927_p6, 1, 0 }
  0xb1   : > { %s3333_s14 = scalar_select %p2936_p4, 1, 0 }
  0xb2   : > { %p2940_p10 = por %p232_p7, %p50_p13  ;;  %s2003_s16 = sshll.u32 %s2934_s26, 3 }
  0xb3   : > { %s2004_s17 = sshll.u32 %s2649_s30, 7  ;;  %s3335_s0 = sld [smem:[#allocation24_spill]] }
  0xb4   : > { %s3334_s10 = scalar_select %p2940_p10, 1, 0 }
  0xb5   : > { %s330_s20 = scalar_lea.vmem [#allocation2], %s2003_s16  ;;  %p2955_p11 = pnand %p2233_p9, %p2921_p0 }
  0xb6   : > { %s337_s23 = sshll.u32 %s330_s20, 4  ;;  %s2005_s2 = sshll.u32 %s2934_s26, 1  ;;  %s2951_s23 = int_to_ptr.vmem [resolvable:$true] %s337_s23 }
  0xb7   : > { %s327_s13 = scalar_lea.sflag [#allocation3], %s2934_s26  ;;  %p2505_p8 = pneg %p2955_p11 }
  0xb9   : > { %s2949_s18 = scalar_lea.hbm %s3335_s0, %s2004_s17  ;;  %s2508_s25 = scalar_lea.hbm %s3335_s0, 256 }
  0xba   : > { %s2503_s17 = scalar_lea.hbm %s2949_s18, 128  ;;  %p2509_p13 = scmp.lt.u32.totalorder %s2949_s18, %s3335_s0 }
  0xbb   : > { %p2504_p12 = scmp.ne.s32.totalorder %s2949_s18, %s2503_s17  ;;  %p2510_p0 = scmp.lt.u32.totalorder %s2508_s25, %s2503_s17 }
  0xbc   : > { %p2512_p5 = scmp.lt.u32.totalorder %s2503_s17, %s2949_s18 }
  0xbd   : > { %p2506_p1 = pnand %p2505_p8, %p2504_p12  ;;  %p2511_p2 = por %p2510_p0, %p2509_p13 }
  0xbf   : > { %p2507_p3 = pneg %p2506_p1  ;;  %p2513_p7 = por %p2512_p5, %p2511_p2 }
  0xc1   : > { %p2514_p9 = pnand %p2513_p7, %p2507_p3 }
  0xc3   : > { %2517 = shalt.err (!%p2514_p9)
}
  0xc4   : > { %s2518_s19 = scalar_lea.vmem %s2951_s23, 128  ;;  %s2659_s16 = smov [#allocation2]  }
  0xc5   : > { %p2519_p12 = scmp.ne.s32.totalorder %s2951_s23, %s2518_s19  ;;  %s2523_s22 = sshll.u32 %s2659_s16, 4  ;;  %s2524_s22 = int_to_ptr.vmem [resolvable:$false] %s2523_s22 }
  0xc6   : > { %s2525_s3 = scalar_lea.vmem %s2524_s22, 256  ;;  %p2526_p4 = scmp.lt.s32.totalorder %s2951_s23, %s2524_s22 }
  0xc7   : > { %p2521_p1 = pnand %p2519_p12, %p2505_p8  ;;  %p2527_p13 = scmp.lt.s32.totalorder %s2525_s3, %s2518_s19 }
  0xc9   : > { %p2522_p10 = pneg %p2521_p1  ;;  %p2528_p0 = por %p2527_p13, %p2526_p4 }
  0xcb   : > { %p2529_p2 = pnand %p2528_p0, %p2522_p10 }
  0xcd   : > { %2532 = shalt.err (!%p2529_p2)
}
  0xce   : > { %2219 = dma.hbm_to_vmem [thread:$0]  (!%p2955_p11), %s2949_s18, 128, %s2951_s23, %s327_s13  }
  0xcf   : > { %s2006_s17 = sshll.u32 %s2649_s30, 5  ;;  %s348_s19 = scalar_lea.vmem [#allocation5], %s2005_s2 }
  0xd0   : > { %s2991_s16 = scalar_lea.hbm %s3305_s1, %s2006_s17  ;;  %s355_s22 = sshll.u32 %s348_s19, 4  ;;  %s356_s22 = int_to_ptr.vmem [resolvable:$true] %s355_s22 }
  0xd1   : > { %s3337_s3 = sand.u32 1, %s2649_s30   ;;  %s2533_s4 = scalar_lea.hbm %s2991_s16, 32 }
  0xd2   : > { %s345_s0 = scalar_lea.sflag [#allocation6], %s3337_s3  ;;  %p2534_p4 = scmp.ne.s32.totalorder %s2991_s16, %s2533_s4 }
  0xd3   : > { %s2538_s13 = scalar_lea.hbm %s3305_s1, 64  ;;  %p2539_p5 = scmp.lt.u32.totalorder %s2991_s16, %s3305_s1 }
  0xd4   : > { %p2536_p10 = pnand %p2534_p4, %p2505_p8  ;;  %p2540_p7 = scmp.lt.u32.totalorder %s2538_s13, %s2533_s4 }
  0xd5   : > { %p2542_p12 = scmp.lt.u32.totalorder %s2533_s4, %s2991_s16 }
  0xd6   : > { %p2537_p3 = pneg %p2536_p10  ;;  %p2541_p9 = por %p2540_p7, %p2539_p5 }
  0xd8   : > { %p2543_p1 = por %p2542_p12, %p2541_p9 }
  0xda   : > { %p2544_p13 = pnand %p2543_p1, %p2537_p3 }
  0xdc   : > { %2547 = shalt.err (!%p2544_p13)
}
  0xdd   : > { %s2548_s2 = scalar_lea.vmem %s356_s22, 32  ;;  %s2660_s25 = smov [#allocation5]  }
  0xde   : > { %p2549_p0 = scmp.ne.s32.totalorder %s356_s22, %s2548_s2  ;;  %s2553_s20 = sshll.u32 %s2660_s25, 4  ;;  %s2554_s20 = int_to_ptr.vmem [resolvable:$false] %s2553_s20 }
  0xdf   : > { %s2555_s19 = scalar_lea.vmem %s2554_s20, 64  ;;  %p2556_p10 = scmp.lt.s32.totalorder %s356_s22, %s2554_s20 }
  0xe0   : > { %p2551_p2 = pnand %p2549_p0, %p2505_p8  ;;  %p2557_p6 = scmp.lt.s32.totalorder %s2555_s19, %s2548_s2 }
  0xe2   : > { %p2552_p4 = pneg %p2551_p2  ;;  %p2558_p5 = por %p2557_p6, %p2556_p10 }
  0xe4   : > { %p2559_p7 = pnand %p2558_p5, %p2552_p4 }
  0xe6   : > { %2562 = shalt.err (!%p2559_p7)
}
  0xe7   : > { %2222 = dma.hbm_to_vmem [thread:$0]  (!%p2955_p11), %s2991_s16, 32, %s356_s22, %s345_s0  }
  0xe8   : > { %p3338_p3 = scmp.ne.s32.totalorder %s3323_s12, 0 }
  0xe9   : > { %s3019_s4 = sand.u32 (!%p3338_p3), 1, %s2641_s28   ;;  %p3339_p6 = scmp.ne.s32.totalorder (!%p3338_p3), %s3332_s21, 0 }
  0xea   : > { %364 = sbr.rel (%p3338_p3) target bundleno = 2839 (0xb17), region = 52  ;;  %s2008_s3 = sshll.u32 (!%p3338_p3), %s3019_s4, 3 }
  0xeb   : > { %s367_s18 = scalar_lea.sflag (!%p3338_p3), [#allocation3], %s3019_s4  ;;  %s370_s23 = scalar_lea.vmem (!%p3338_p3), [#allocation2], %s2008_s3 }
  0xf1   : > { %2608 = dma.done.wait (%p3339_p6), %s367_s18, 128  }
  0xf2   : > { %2610 = vsyncadd (%p3339_p6), %s367_s18, 4294967168  ;;  %s375_s0 = sand.u32 1, %s2740_s11   ;;  %s2009_s12 = sshll.u32 %s3019_s4, 1 }
  0xf3   : > { %s376_s9 = scalar_lea.sflag [#allocation6], %s375_s0  ;;  %s3031_s16 = scalar_lea.vmem [#allocation5], %s2009_s12 }
  0xf4   : > { %2612 = dma.done.wait (%p3339_p6), %s376_s9, 32  }
  0xf5   : > { %2614 = vsyncadd (%p3339_p6), %s376_s9, 4294967264  ;;  %p3340_p11 = scmp.eq.s32.totalorder %s2740_s11, 0 }
  0xf7   : > { %2616 = dma.done.wait (%p3340_p11), [#allocation6], 256   ;;  %p3341_p8 = pmov %p3340_p11 }
  0xf9   : > { %2618 = vsyncadd (%p3341_p8), [#allocation6], 4294967040  ;;  %p3342_p9 = pmov %p3341_p8 }
  0xfa   : > { %p3343_p12 = pmov %p3341_p8 }
  0xfb   : > { %2620 = dma.done.wait (%p3342_p9), [#allocation9], 512  }
  0xfc   : > { %2622 = vsyncadd (%p3343_p12), [#allocation9], 4294966784  ;;  %p3344_p1 = pmov %p3341_p8 }
  0xfe   : > { %2624 = dma.done.wait (%p3344_p1), [#allocation12], 528   ;;  %p3345_p13 = pmov %p3344_p1 }
  0xff   : > { %p3346_p0 = pmov %p3344_p1 }
 0x100   : > { %2626 = vsyncadd (%p3345_p13), [#allocation12], 4294966768 }
 0x101   : > { %2628 = dma.done.wait (%p3346_p0), [#allocation15], 16   ;;  %p3347_p2 = pmov %p3346_p0 }
 0x102   : > { %vm443_vm0 = vcmask 261120   ;;  %v3053_v0 = vld [vmem:[%s370_s23] sm:$0xff]  ;;  %v2293_v7 = vld [vmem:[#allocation7] sm:$0xff]   ;;  %v2661_v8 = vmov 0.0   ;;  %vm2662_vm1 = vmmov 0   ;;  %s2663_s21 = smov 104   ;;  %v544_v33 = vlaneseq }
 0x103   : > { %2630 = vsyncadd (%p3347_p2), [#allocation15], 4294967280  ;;  %v444_v1 = vsel %vm443_vm0, %v3053_v0, 0.0  ;;  %2083 = vmatprep.subr.bf16.mxu0 %v2661_v8  ;;  %2087 = vmatprep.mubr.msk.bf16.mxu0 %vm2662_vm1, %v2661_v8  ;;  %v2294_v9 = vld [vmem:[#allocation7 + $0x8] sm:$0xff]   ;;  %s2664_s22 = smov 120   ;;  %s2665_s13 = smov 112  }
 0x104   : > { %445 = vadd.xlane.f32.xlu0 %v444_v1  ;;  %2084 = vmatpush3.bf16.msra.mxu0 %v2293_v7  ;;  %s2666_s26 = smov 96   ;;  %s2667_s17 = smov 64   ;;  %v2668_v31 = vmov 1983009808   ;;  %v2669_v35 = vmov 1934713408  }
 0x105   : > { %2091 = vmatprep.subr.bf16.mxu1 %v2661_v8  ;;  %2085 = vmatprep.subr.bf16.mxu0 %v2661_v8  ;;  %v542_v32 = vunpack.c.l.s4 %v2668_v31  ;;  %v574_v36 = vunpack.c.l.s4 %v2669_v35  ;;  %v545_v38 = vshrl.u32 %v544_v33, 7  ;;  %vm993_vm4 = vcmask 64512   ;;  %s2670_s2 = smov 16   ;;  %s2671_s25 = smov 8  }
 0x106   : > { %2093 = vmatprep.mubr.msk.bf16.mxu1 %vm2662_vm1, %v2661_v8  ;;  %vm1247_vm6 = vcmask 1043456   ;;  %s2672_s20 = smov 24   ;;  %vm1590_vm7 = vcmask 130048   ;;  %vm1592_vm8 = vcmask 195584   ;;  %vm1784_vm11 = vcmask 523264   ;;  %s2050_s19 = sshll.u32 %s2740_s11, 7 }
 0x107   : > { %v543_v37 = vunpack.c.0.s8 %v542_v32  ;;  %v575_v40 = vunpack.c.0.s8 %v574_v36  ;;  %s440_s18 = scalar_lea.vmem [#allocation16], %s2008_s3  ;;  %s3259_s9 = scalar_lea.hbm %s3312_s8, %s2050_s19 }
 0x108   : > { %2086 = vmatpush3.bf16.msra.mxu0 %v2294_v9  ;;  %s1844_s23 = sshll.u32 %s440_s18, 4  ;;  %s1831_s11 = scalar_lea.sflag [#allocation4], %s3019_s4  ;;  %s3261_s23 = int_to_ptr.vmem [resolvable:$true] %s1844_s23 }
 0x109   : > { %2097 = vmatprep.subr.bf16.mxu0 %v2661_v8  ;;  %v3083_v41 = vsub.s32 %v543_v37, %v545_v38  ;;  %v3085_v47 = vsub.s32 %v575_v40, %v545_v38  ;;  %s2563_s3 = scalar_lea.vmem %s3261_s23, 128  ;;  %p3350_p10 = scmp.ne.s32.totalorder %s3333_s14, 0 }
 0x10a   : > { %p2564_p4 = scmp.ne.s32.totalorder %s3261_s23, %s2563_s3 }
 0x10c   : > { %p2565_p5 = pnand %p2564_p4, %p3350_p10 }
 0x10e   : > { %p2566_p7 = pneg %p2565_p5 }
 0x191   : > { %v446_v2 = vpop.xlane.xlu0 %445 }
 0x192   : > { %v448_v3 = vmul.f32 0.03125, %v446_v2 }
 0x194   : > { %v449_v4 = vsub.f32 %v3053_v0, %v448_v3 }
 0x196   : > { %v450_v5 = vmul.f32 %v449_v4, %v449_v4 }
 0x198   : > { %v451_v6 = vsel %vm443_vm0, %v450_v5, 0.0 }
 0x199   : > { %452 = vadd.xlane.f32.xlu0 %v451_v6 }
 0x226   : > { %v453_v10 = vpop.xlane.xlu0 %452 }
 0x227   : > { %v455_v11 = vmul.f32 0.032258064, %v453_v10 }
 0x229   : > { %2303 = vrsqrt.f32 %v455_v11  ;;  %vm458_vm2 = vcmp.eq.f32.partialorder %v455_v11, inf  ;;  %v461_v14 = vand.u32 2147483648, %v455_v11  ;;  %vm460_vm3 = vcmp.eq.f32.partialorder %v455_v11, 0.0 }
 0x233   : > { %v2304_v12 = vpop.eup %2303 }
 0x234   : > { %v457_v13 = vmul.f32 %v2304_v12, %v455_v11 }
 0x236   : > { %v459_v15 = vsel %vm458_vm2, %v455_v11, %v457_v13 }
 0x237   : > { %v462_v16 = vsel %vm460_vm3, %v461_v14, %v459_v15 }
 0x238   : > { %v463_v17 = vadd.f32 1e-06, %v462_v16 }
 0x23a   : > { %2305 = vrcp.f32 %v463_v17 }
 0x244   : > { %v2306_v18 = vpop.eup %2305 }
 0x245   : > { %v466_v19 = vmul.f32 %v2306_v18, %v449_v4 }
 0x247   : > { %v467_v20 = vadd.f32 1.0, %v466_v19 }
 0x249   : > { %v468_v21 = vpack.c.bf16 %v467_v20, %v467_v20 }
 0x24b   : > { %2088 = vmatmul.mubr.msk.bf16.vlgmr.msra.gmra.mrb[0].mxu0 %vm443_vm0, %v468_v21 }
 0x24c   : > { %2099 = vmatprep.mubr.msk.bf16.mxu0 %vm2662_vm1, %v2661_v8 }
 0x31e   : > { %v522_v22 = vpop.f32.mrb[0].mxu0 }
 0x31f   : > { %684 = vrot.lane.b32.xlu0 %v522_v22, %s2663_s21  ;;  %680 = vrot.lane.b32.xlu1 %v522_v22, %s2664_s22  ;;  %v2089_v23 = vpop.f32.mrb[1].mxu0  ;;  %v3070_v25 = vmul.f32 0.35355338, %v522_v22 }
 0x320   : > { %v525_v24 = vpop.f32.mrb[2].mxu0 }
 0x321   : > { %v2090_v26 = vpop.f32.mrb[3].mxu0 }
 0x323   : > { %682 = vrot.lane.b32.xlu1 %v522_v22, %s2665_s13  ;;  %536 = vrot.lane.b32.xlu0 %v3070_v25, %s2663_s21 }
 0x327   : > { %686 = vrot.lane.b32.xlu1 %v522_v22, %s2666_s26  ;;  %838 = vrot.lane.b32.xlu0 %v522_v22, %s2667_s17 }
 0x391   : > { %v681_v27 = vpop.permute.xlu1 %680  ;;  %v3077_v29 = vpop.permute.xlu0 %684 }
 0x392   : > { %688 = vrot.lane.b32.xlu1 %v681_v27, %s2666_s26 }
 0x395   : > { %v3074_v28 = vpop.permute.xlu1 %682  ;;  %v537_v57 = vpop.permute.xlu0 %536 }
 0x396   : > { %690 = vrot.lane.b32.xlu1 %v3074_v28, %s2666_s26 }
 0x399   : > { %v687_v30 = vpop.permute.xlu1 %686 }
 0x39a   : > { %692 = vrot.lane.b32.xlu1 %v3077_v29, %s2666_s26 }
 0x39e   : > { %530 = vrot.lane.b32.xlu1 %v3070_v25, %s2664_s22 }
 0x3a2   : > { %533 = vrot.lane.b32.xlu1 %v3070_v25, %s2665_s13 }
 0x3a6   : > { %840 = vrot.lane.b32.xlu1 %v681_v27, %s2667_s17 }
 0x404   : > { %v689_v34 = vpop.permute.xlu1 %688 }
 0x408   : > { %v691_v39 = vpop.permute.xlu1 %690 }
 0x409   : > { %v698_v42 = vcombine.low %v687_v30, %v691_v39  ;;  %v699_v43 = vcombine.high %v687_v30, %v691_v39 }
 0x40b   : > { %v706_v48 = vrot.slane %v698_v42, %v3083_v41  ;;  %v713_v49 = vrot.slane %v699_v43, %v3083_v41 }
 0x40c   : > { %v693_v44 = vpop.permute.xlu1 %692 }
 0x40d   : > { %v714_v45 = vcombine.low %v689_v34, %v693_v44  ;;  %v715_v46 = vcombine.high %v689_v34, %v693_v44 }
 0x40f   : > { %v722_v50 = vrot.slane %v714_v45, %v3083_v41  ;;  %v729_v51 = vrot.slane %v715_v46, %v3083_v41 }
 0x410   : > { %v531_v52 = vpop.permute.xlu1 %530 }
 0x411   : > { %v730_v53 = vcombine.low %v706_v48, %v722_v50  ;;  %v731_v54 = vcombine.high %v706_v48, %v722_v50  ;;  %v746_v55 = vcombine.low %v713_v49, %v729_v51  ;;  %v747_v56 = vcombine.high %v713_v49, %v729_v51 }
 0x412   : > { %v555_v62 = vcombine.low %v531_v52, %v537_v57  ;;  %v556_v63 = vcombine.high %v531_v52, %v537_v57 }
 0x413   : > { %v738_v58 = vrot.slane %v730_v53, %v3085_v47  ;;  %v745_v59 = vrot.slane %v731_v54, %v3085_v47  ;;  %v754_v60 = vrot.slane %v746_v55, %v3085_v47  ;;  %v761_v61 = vrot.slane %v747_v56, %v3085_v47 }
 0x414   : > { %v534_v1 = vpop.permute.xlu1 %533  ;;  %v563_v13 = vrot.slane %v555_v62, %v3083_v41  ;;  %v570_v14 = vrot.slane %v556_v63, %v3083_v41 }
 0x415   : > { %v766_v2 = vcombine.low %v738_v58, %v745_v59  ;;  %v2022_v3 = vcombine.high %v738_v58, %v745_v59  ;;  %v782_v4 = vcombine.low %v754_v60, %v761_v61  ;;  %v2023_v5 = vcombine.high %v754_v60, %v761_v61 }
 0x416   : > { %v539_v6 = vcombine.low %v3070_v25, %v534_v1  ;;  %v540_v7 = vcombine.high %v3070_v25, %v534_v1 }
 0x417   : > { %v773_v9 = vrot.slane %v766_v2, %v3083_v41  ;;  %v781_v10 = vrot.slane %v2022_v3, %v3083_v41  ;;  %v789_v11 = vrot.slane %v782_v4, %v3083_v41  ;;  %v797_v12 = vrot.slane %v2023_v5, %v3083_v41 }
 0x418   : > { %v547_v15 = vrot.slane %v539_v6, %v3083_v41  ;;  %v554_v16 = vrot.slane %v540_v7, %v3083_v41 }
 0x419   : > { %v798_v17 = vcombine.low %v773_v9, %v781_v10  ;;  %v814_v18 = vcombine.low %v789_v11, %v797_v12  ;;  %v799_v25 = vcombine.high %v773_v9, %v781_v10  ;;  %v815_v26 = vcombine.high %v789_v11, %v797_v12  ;;  %v990_v11 = vld [vmem:[%s3031_s16] sm:$0x3]  ;;  %s2673_s16 = smov [#allocation16]  }
 0x41a   : > { %v571_v19 = vcombine.low %v547_v15, %v563_v13  ;;  %v572_v20 = vcombine.high %v547_v15, %v563_v13  ;;  %v587_v21 = vcombine.low %v554_v16, %v570_v14  ;;  %v588_v22 = vcombine.high %v554_v16, %v570_v14  ;;  %s2567_s21 = sshll.u32 %s2673_s16, 4  ;;  %s2568_s21 = int_to_ptr.vmem [resolvable:$false] %s2567_s21 }
 0x41b   : > { %v806_v23 = vrot.slane %v798_v17, %v3085_v47  ;;  %v822_v24 = vrot.slane %v814_v18, %v3085_v47  ;;  %v813_v42 = vrot.slane %v799_v25, %v3085_v47  ;;  %v829_v43 = vrot.slane %v815_v26, %v3085_v47  ;;  %s2569_s22 = scalar_lea.vmem %s2568_s21, 256  ;;  %p2570_p3 = scmp.lt.s32.totalorder %s3261_s23, %s2568_s21 }
 0x41c   : > { %v579_v27 = vrot.slane %v571_v19, %v3085_v47  ;;  %v586_v30 = vrot.slane %v572_v20, %v3085_v47  ;;  %v595_v31 = vrot.slane %v587_v21, %v3085_v47  ;;  %v602_v32 = vrot.slane %v588_v22, %v3085_v47  ;;  %p2571_p6 = scmp.lt.s32.totalorder %s2569_s22, %s2563_s3 }
 0x41d   : > { %v830_v33 = vcombine.low %v806_v23, %v822_v24  ;;  %v831_v34 = vcombine.high %v806_v23, %v822_v24  ;;  %v832_v53 = vcombine.low %v813_v42, %v829_v43  ;;  %v833_v54 = vcombine.high %v813_v42, %v829_v43 }
 0x41e   : > { %v607_v35 = vcombine.low %v579_v27, %v586_v30  ;;  %v2020_v36 = vcombine.high %v579_v27, %v586_v30  ;;  %v623_v37 = vcombine.low %v595_v31, %v602_v32  ;;  %v2021_v38 = vcombine.high %v595_v31, %v602_v32  ;;  %p2572_p11 = por %p2571_p6, %p2570_p3 }
 0x41f   : > { %v834_v39 = vpack.c.bf16 %v830_v33, %v830_v33  ;;  %v835_v40 = vpack.c.bf16 %v831_v34, %v831_v34  ;;  %v836_v61 = vpack.c.bf16 %v832_v53, %v832_v53  ;;  %v837_v62 = vpack.c.bf16 %v833_v54, %v833_v54 }
 0x420   : > { %v614_v44 = vrot.slane %v607_v35, %v3083_v41  ;;  %v622_v45 = vrot.slane %v2020_v36, %v3083_v41  ;;  %v630_v46 = vrot.slane %v623_v37, %v3083_v41  ;;  %v638_v48 = vrot.slane %v2021_v38, %v3083_v41  ;;  %p2573_p8 = pnand %p2572_p11, %p2566_p7 }
 0x421   : > { %v998_v49 = vsel %vm993_vm4, %v834_v39, 0  ;;  %v1044_v50 = vsel %vm993_vm4, %v835_v40, 0  ;;  %v1090_v4 = vsel %vm993_vm4, %v836_v61, 0  ;;  %v1136_v5 = vsel %vm993_vm4, %v837_v62, 0  ;;  %v841_v40 = vpop.permute.xlu1 %840 }
 0x422   : > { %2092 = vmatpush3.bf16.xpose.msra.mxu1 %v998_v49  ;;  %2098 = vmatpush3.bf16.xpose.msra.mxu0 %v1044_v50  ;;  %v639_v51 = vcombine.low %v614_v44, %v622_v45  ;;  %v655_v52 = vcombine.low %v630_v46, %v638_v48  ;;  %v640_v56 = vcombine.high %v614_v44, %v622_v45  ;;  %v991_v12 = vunpack.c.0.s8 %v990_v11 }
 0x423   : > { %2103 = vmatprep.subr.bf16.mxu1 %v2661_v8  ;;  %2109 = vmatprep.subr.bf16.mxu0 %v2661_v8  ;;  %v656_v57 = vcombine.high %v630_v46, %v638_v48 }
 0x424   : > { %v647_v55 = vrot.slane %v639_v51, %v3085_v47  ;;  %v663_v58 = vrot.slane %v655_v52, %v3085_v47  ;;  %v654_v2 = vrot.slane %v640_v56, %v3085_v47  ;;  %vm3142_vm5 = vcmp.ne.s32.totalorder %v991_v12, 0 }
 0x425   : > { %v670_v3 = vrot.slane %v656_v57, %v3085_v47 }
 0x426   : > { %v671_v59 = vcombine.low %v647_v55, %v663_v58  ;;  %v672_v60 = vcombine.high %v647_v55, %v663_v58 }
 0x427   : > { %v673_v6 = vcombine.low %v654_v2, %v670_v3  ;;  %v674_v7 = vcombine.high %v654_v2, %v670_v3 }
 0x428   : > { %v675_v63 = vpack.c.bf16 %v671_v59, %v671_v59  ;;  %v676_v1 = vpack.c.bf16 %v672_v60, %v672_v60 }
 0x429   : > { %v677_v9 = vpack.c.bf16 %v673_v6, %v673_v6  ;;  %v678_v10 = vpack.c.bf16 %v674_v7, %v674_v7 }
 0x42a   : > { %2094 = vmatmul.mubr.msk.bf16.vlgmr.msra.gmra.mrb[0].mxu1 %vm993_vm4, %v675_v63  ;;  %2100 = vmatmul.mubr.msk.bf16.vlgmr.msra.gmra.mrb[4].mxu0 %vm993_vm4, %v676_v1 }
 0x42b   : > { %2104 = vmatpush3.bf16.xpose.msra.mxu1 %v1090_v4  ;;  %2110 = vmatpush3.bf16.xpose.msra.mxu0 %v1136_v5 }
 0x42c   : > { %2105 = vmatprep.mubr.msk.bf16.mxu1 %vm2662_vm1, %v2661_v8  ;;  %2111 = vmatprep.mubr.msk.bf16.mxu0 %vm2662_vm1, %v2661_v8 }
 0x42d   : > { %2115 = vmatprep.subr.bf16.mxu1 %v2661_v8  ;;  %2121 = vmatprep.subr.bf16.mxu0 %v2661_v8 }
 0x432   : > { %2106 = vmatmul.mubr.msk.bf16.vlgmr.msra.gmra.mrb[4].mxu1 %vm993_vm4, %v677_v9  ;;  %2112 = vmatmul.mubr.msk.bf16.vlgmr.msra.gmra.mrb[8].mxu0 %vm993_vm4, %v678_v10 }
 0x433   : > { %2117 = vmatprep.mubr.msk.bf16.mxu1 %vm2662_vm1, %v2661_v8  ;;  %2123 = vmatprep.mubr.msk.bf16.mxu0 %vm2662_vm1, %v2661_v8 }
 0x4fd   : > { %v1034_v14 = vpop.f32.mrb[0].mxu1  ;;  %v1080_v15 = vpop.f32.mrb[4].mxu0 }
 0x4fe   : > { %v1180_v16 = vsel %vm3142_vm5, %v1034_v14, -1e+09  ;;  %v1181_v17 = vsel %vm3142_vm5, %v1080_v15, -1e+09  ;;  %v2095_v18 = vpop.f32.mrb[1].mxu1  ;;  %v2101_v19 = vpop.f32.mrb[5].mxu0 }
 0x4ff   : > { %v1037_v20 = vpop.f32.mrb[2].mxu1  ;;  %v1083_v21 = vpop.f32.mrb[6].mxu0  ;;  %v1184_v22 = vsel %vm993_vm4, %v1180_v16, -inf  ;;  %v1187_v23 = vsel %vm993_vm4, %v1181_v17, -inf }
 0x500   : > { %1185 = vmax.xlane.f32.xlu1 %v1184_v22  ;;  %v2096_v24 = vpop.f32.mrb[3].mxu1  ;;  %1188 = vmax.xlane.f32.xlu0 %v1187_v23  ;;  %v2102_v25 = vpop.f32.mrb[7].mxu0 }
 0x505   : > { %v1126_v26 = vpop.f32.mrb[4].mxu1  ;;  %v1172_v27 = vpop.f32.mrb[8].mxu0 }
 0x506   : > { %v2107_v30 = vpop.f32.mrb[5].mxu1  ;;  %v2113_v31 = vpop.f32.mrb[9].mxu0  ;;  %v3158_v36 = vsel %vm3142_vm5, %v1126_v26, -1e+09  ;;  %v3162_v37 = vsel %vm3142_vm5, %v1172_v27, -1e+09 }
 0x507   : > { %v1129_v32 = vpop.f32.mrb[6].mxu1  ;;  %v1175_v33 = vpop.f32.mrb[10].mxu0  ;;  %v1190_v38 = vsel %vm993_vm4, %v3158_v36, -inf  ;;  %v1193_v39 = vsel %vm993_vm4, %v3162_v37, -inf }
 0x508   : > { %v2108_v34 = vpop.f32.mrb[7].mxu1  ;;  %v2114_v35 = vpop.f32.mrb[11].mxu0 }
 0x511   : > { %842 = vrot.lane.b32.xlu1 %v3074_v28, %s2667_s17  ;;  %v839_v28 = vpop.permute.xlu0 %838 }
 0x516   : > { %844 = vrot.lane.b32.xlu0 %v3077_v29, %s2667_s17 }
 0x535   : > { %1191 = vmax.xlane.f32.xlu1 %v1190_v38  ;;  %1194 = vmax.xlane.f32.xlu0 %v1193_v39 }
 0x58d   : > { %v3168_v42 = vpop.xlane.xlu1 %1185  ;;  %v3170_v29 = vpop.xlane.xlu0 %1188 }
 0x58e   : > { %v1208_v43 = vsub.f32 %v1180_v16, %v3168_v42  ;;  %v1209_v44 = vsub.f32 %v1181_v17, %v3170_v29 }
 0x590   : > { %v1212_v45 = vmul.f32 1.442695, %v1208_v43  ;;  %v1214_v46 = vmul.f32 1.442695, %v1209_v44 }
 0x591   : > { %v843_v48 = vpop.permute.xlu1 %842  ;;  %v845_v49 = vpop.permute.xlu0 %844 }
 0x592   : > { %v850_v50 = vcombine.low %v839_v28, %v843_v48  ;;  %v851_v51 = vcombine.high %v839_v28, %v843_v48  ;;  %v866_v52 = vcombine.low %v841_v40, %v845_v49  ;;  %2307 = vpow2.f32 %v1212_v45 }
 0x593   : > { %v867_v53 = vcombine.high %v841_v40, %v845_v49  ;;  %2309 = vpow2.f32 %v1214_v46 }
 0x594   : > { %v858_v54 = vrot.slane %v850_v50, %v3083_v41  ;;  %v865_v55 = vrot.slane %v851_v51, %v3083_v41  ;;  %v874_v56 = vrot.slane %v866_v52, %v3083_v41 }
 0x595   : > { %v881_v57 = vrot.slane %v867_v53, %v3083_v41 }
 0x596   : > { %v882_v58 = vcombine.low %v858_v54, %v874_v56  ;;  %v883_v59 = vcombine.high %v858_v54, %v874_v56 }
 0x597   : > { %v898_v60 = vcombine.low %v865_v55, %v881_v57  ;;  %v899_v61 = vcombine.high %v865_v55, %v881_v57 }
 0x598   : > { %v890_v62 = vrot.slane %v882_v58, %v3085_v47  ;;  %v897_v63 = vrot.slane %v883_v59, %v3085_v47 }
 0x599   : > { %v906_v1 = vrot.slane %v898_v60, %v3085_v47  ;;  %v913_v2 = vrot.slane %v899_v61, %v3085_v47 }
 0x59a   : > { %v918_v3 = vcombine.low %v890_v62, %v897_v63  ;;  %v2024_v4 = vcombine.high %v890_v62, %v897_v63 }
 0x59b   : > { %v934_v5 = vcombine.low %v906_v1, %v913_v2  ;;  %v2025_v6 = vcombine.high %v906_v1, %v913_v2 }
 0x59c   : > { %v925_v7 = vrot.slane %v918_v3, %v3083_v41  ;;  %v933_v9 = vrot.slane %v2024_v4, %v3083_v41  ;;  %v2308_v10 = vpop.eup %2307 }
 0x59d   : > { %v941_v11 = vrot.slane %v934_v5, %v3083_v41  ;;  %v949_v12 = vrot.slane %v2025_v6, %v3083_v41  ;;  %v1224_v13 = vsel %vm993_vm4, %v2308_v10, 0.0  ;;  %v2310_v16 = vpop.eup %2309  ;;  %v1240_v38 = vpack.c.bf16 %v2308_v10, %v2308_v10 }
 0x59e   : > { %v950_v14 = vcombine.low %v925_v7, %v933_v9  ;;  %v951_v15 = vcombine.high %v925_v7, %v933_v9  ;;  %1225 = vadd.xlane.f32.xlu0 %v1224_v13  ;;  %v1227_v19 = vsel %vm993_vm4, %v2310_v16, 0.0  ;;  %v1241_v39 = vpack.c.bf16 %v2310_v16, %v2310_v16 }
 0x59f   : > { %v966_v17 = vcombine.low %v941_v11, %v949_v12  ;;  %v967_v18 = vcombine.high %v941_v11, %v949_v12  ;;  %1228 = vadd.xlane.f32.xlu1 %v1227_v19 }
 0x5a0   : > { %v958_v20 = vrot.slane %v950_v14, %v3085_v47  ;;  %v965_v21 = vrot.slane %v951_v15, %v3085_v47 }
 0x5a1   : > { %v974_v22 = vrot.slane %v966_v17, %v3085_v47  ;;  %v981_v23 = vrot.slane %v967_v18, %v3085_v47 }
 0x5a3   : > { %v982_v24 = vcombine.low %v958_v20, %v974_v22  ;;  %v983_v25 = vcombine.high %v958_v20, %v974_v22  ;;  %v984_v26 = vcombine.low %v965_v21, %v981_v23  ;;  %v985_v27 = vcombine.high %v965_v21, %v981_v23 }
 0x5a5   : > { %v986_v30 = vpack.c.bf16 %v982_v24, %v982_v24  ;;  %v987_v31 = vpack.c.bf16 %v983_v25, %v983_v25  ;;  %v988_v34 = vpack.c.bf16 %v984_v26, %v984_v26  ;;  %v989_v35 = vpack.c.bf16 %v985_v27, %v985_v27 }
 0x5a7   : > { %v1249_v32 = vsel %vm1247_vm6, %v986_v30, 0  ;;  %v1295_v33 = vsel %vm1247_vm6, %v987_v31, 0  ;;  %v1341_v28 = vsel %vm1247_vm6, %v988_v34, 0  ;;  %v1387_v40 = vsel %vm1247_vm6, %v989_v35, 0 }
 0x5a8   : > { %2116 = vmatpush3.bf16.msra.mxu1 %v1249_v32  ;;  %2122 = vmatpush3.bf16.msra.mxu0 %v1295_v33 }
 0x5a9   : > { %2127 = vmatprep.subr.bf16.mxu1 %v2661_v8  ;;  %2133 = vmatprep.subr.bf16.mxu0 %v2661_v8 }
 0x5ab   : > { %2118 = vmatmul.mubr.msk.bf16.vlgmr.msra.gmra.mrb[8].mxu1 %vm993_vm4, %v1240_v38  ;;  %2124 = vmatmul.mubr.msk.bf16.vlgmr.msra.gmra.mrb[12].mxu0 %vm993_vm4, %v1241_v39 }
 0x5ac   : > { %2128 = vmatpush3.bf16.msra.mxu1 %v1341_v28  ;;  %2134 = vmatpush3.bf16.msra.mxu0 %v1387_v40 }
 0x5ad   : > { %2129 = vmatprep.mubr.msk.bf16.mxu1 %vm2662_vm1, %v2661_v8  ;;  %2135 = vmatprep.mubr.msk.bf16.mxu0 %vm2662_vm1, %v2661_v8 }
 0x5ae   : > { %2139 = vmatprep.subr.bf16.mxu1 %v2661_v8  ;;  %2147 = vmatprep.subr.bf16.mxu0 %v2661_v8 }
 0x5c2   : > { %v1192_v43 = vpop.xlane.xlu1 %1191  ;;  %v1195_v44 = vpop.xlane.xlu0 %1194 }
 0x5c3   : > { %v1210_v45 = vsub.f32 %v3158_v36, %v1192_v43  ;;  %v1211_v46 = vsub.f32 %v3162_v37, %v1195_v44  ;;  %v1196_v36 = vsub.f32 -inf, %v3168_v42  ;;  %v1197_v37 = vsub.f32 -inf, %v3170_v29 }
 0x5c4   : > { %v1198_v16 = vsub.f32 -inf, %v1192_v43  ;;  %v1199_v17 = vsub.f32 -inf, %v1195_v44 }
 0x5c5   : > { %v1216_v48 = vmul.f32 1.442695, %v1210_v45  ;;  %v1218_v49 = vmul.f32 1.442695, %v1211_v46  ;;  %v1200_v56 = vmul.f32 1.442695, %v1196_v36 }
 0x5c6   : > { %v1202_v57 = vmul.f32 1.442695, %v1197_v37  ;;  %v1204_v18 = vmul.f32 1.442695, %v1198_v16  ;;  %v1206_v19 = vmul.f32 1.442695, %v1199_v17 }
 0x5c7   : > { %2311 = vpow2.f32 %v1216_v48  ;;  %v2295_v36 = vld [vmem:[#allocation8] sm:$0xff]  }
 0x5c8   : > { %2313 = vpow2.f32 %v1218_v49 }
 0x5c9   : > { %2315 = vpow2.f32 %v1200_v56 }
 0x5ca   : > { %2317 = vpow2.f32 %v1202_v57 }
 0x5d1   : > { %v2312_v50 = vpop.eup %2311 }
 0x5d2   : > { %v1230_v51 = vsel %vm993_vm4, %v2312_v50, 0.0  ;;  %v1242_v52 = vpack.c.bf16 %v2312_v50, %v2312_v50  ;;  %v2314_v53 = vpop.eup %2313 }
 0x5d3   : > { %1231 = vadd.xlane.f32.xlu0 %v1230_v51  ;;  %v1233_v54 = vsel %vm993_vm4, %v2314_v53, 0.0  ;;  %v1243_v55 = vpack.c.bf16 %v2314_v53, %v2314_v53  ;;  %v2316_v58 = vpop.eup %2315 }
 0x5d4   : > { %2130 = vmatmul.mubr.msk.bf16.vlgmr.msra.gmra.mrb[12].mxu1 %vm993_vm4, %v1242_v52  ;;  %1234 = vadd.xlane.f32.xlu1 %v1233_v54  ;;  %v2318_v59 = vpop.eup %2317  ;;  %v1220_v62 = vmul.f32 0.0, %v2316_v58 }
 0x5d5   : > { %2143 = vmatprep.mubr.msk.bf16.mxu1 %vm2662_vm1, %v2661_v8  ;;  %2136 = vmatmul.mubr.msk.bf16.vlgmr.msra.gmra.mrb[16].mxu0 %vm993_vm4, %v1243_v55  ;;  %v1221_v63 = vmul.f32 0.0, %v2318_v59 }
 0x5d6   : > { %2151 = vmatprep.mubr.msk.bf16.mxu0 %vm2662_vm1, %v2661_v8  ;;  %2140 = vmatpush3.bf16.msra.mxu1 %v2295_v36 }
 0x5d7   : > { %2141 = vmatprep.subr.bf16.mxu1 %v2661_v8 }
 0x62b   : > { %v1226_v60 = vpop.xlane.xlu0 %1225 }
 0x62c   : > { %v1229_v61 = vpop.xlane.xlu1 %1228  ;;  %v1236_v1 = vadd.f32 %v1226_v60, %v1220_v62 }
 0x62d   : > { %v1237_v2 = vadd.f32 %v1229_v61, %v1221_v63 }
 0x62e   : > { %2319 = vrcp.f32 %v1236_v1 }
 0x62f   : > { %2321 = vrcp.f32 %v1237_v2 }
 0x630   : > { %2323 = vpow2.f32 %v1204_v18 }
 0x631   : > { %2325 = vpow2.f32 %v1206_v19 }
 0x638   : > { %v2320_v5 = vpop.eup %2319 }
 0x639   : > { %v2322_v9 = vpop.eup %2321 }
 0x63a   : > { %v2324_v20 = vpop.eup %2323 }
 0x63b   : > { %v2326_v21 = vpop.eup %2325  ;;  %v1222_v23 = vmul.f32 0.0, %v2324_v20 }
 0x63c   : > { %v1223_v25 = vmul.f32 0.0, %v2326_v21 }
 0x660   : > { %v1232_v22 = vpop.xlane.xlu0 %1231 }
 0x661   : > { %v1235_v24 = vpop.xlane.xlu1 %1234  ;;  %v1238_v26 = vadd.f32 %v1232_v22, %v1222_v23 }
 0x662   : > { %v1239_v27 = vadd.f32 %v1235_v24, %v1223_v25 }
 0x663   : > { %2327 = vrcp.f32 %v1238_v26 }
 0x664   : > { %2329 = vrcp.f32 %v1239_v27 }
 0x66d   : > { %v2328_v33 = vpop.eup %2327 }
 0x66e   : > { %v2330_v43 = vpop.eup %2329 }
 0x67e   : > { %v1285_v3 = vpop.f32.mrb[8].mxu1  ;;  %v1331_v4 = vpop.f32.mrb[12].mxu0 }
 0x67f   : > { %v1429_v42 = vadd.f32 %v1285_v3, %v1220_v62  ;;  %v1430_v6 = vadd.f32 %v1331_v4, %v1221_v63  ;;  %v2119_v29 = vpop.f32.mrb[9].mxu1  ;;  %v2125_v7 = vpop.f32.mrb[13].mxu0  ;;  %v2296_v63 = vld [vmem:[#allocation8 + $0x8] sm:$0xff]  }
 0x680   : > { %v1288_v10 = vpop.f32.mrb[10].mxu1  ;;  %v1334_v11 = vpop.f32.mrb[14].mxu0  ;;  %2142 = vmatpush3.bf16.msra.mxu1 %v2296_v63 }
 0x681   : > { %v1437_v12 = vmul.f32 %v2320_v5, %v1429_v42  ;;  %v1438_v13 = vmul.f32 %v2322_v9, %v1430_v6  ;;  %v2120_v14 = vpop.f32.mrb[11].mxu1  ;;  %v2126_v15 = vpop.f32.mrb[15].mxu0  ;;  %2155 = vmatprep.subr.bf16.mxu1 %v2661_v8 }
 0x6a7   : > { %v1377_v30 = vpop.f32.mrb[12].mxu1 }
 0x6a8   : > { %v1431_v31 = vadd.f32 %v1377_v30, %v1222_v23  ;;  %v2131_v32 = vpop.f32.mrb[13].mxu1  ;;  %v1423_v34 = vpop.f32.mrb[16].mxu0 }
 0x6a9   : > { %v1380_v35 = vpop.f32.mrb[14].mxu1  ;;  %v1432_v39 = vadd.f32 %v1423_v34, %v1223_v25  ;;  %v2137_v28 = vpop.f32.mrb[17].mxu0 }
 0x6aa   : > { %v1439_v38 = vmul.f32 %v2328_v33, %v1431_v31  ;;  %v2132_v40 = vpop.f32.mrb[15].mxu1  ;;  %v1426_v44 = vpop.f32.mrb[18].mxu0  ;;  %v2297_v28 = vld [vmem:[#allocation10] sm:$0xff]  }
 0x6ab   : > { %v1440_v48 = vmul.f32 %v2330_v43, %v1432_v39  ;;  %v2138_v49 = vpop.f32.mrb[19].mxu0  ;;  %2148 = vmatpush3.bf16.msra.mxu0 %v2297_v28  ;;  %v2298_v40 = vld [vmem:[#allocation10 + $0x8] sm:$0xff]   ;;  %v2300_v43 = vld [vmem:[#allocation13 + $0x8] sm:$0xff]  }
 0x6ac   : > { %v1441_v45 = vcombine.low %v1437_v12, %v1439_v38  ;;  %v1442_v46 = vcombine.high %v1437_v12, %v1439_v38  ;;  %2149 = vmatprep.subr.bf16.mxu0 %v2661_v8 }
 0x6ad   : > { %v1457_v52 = vcombine.low %v1438_v13, %v1440_v48  ;;  %v1458_v53 = vcombine.high %v1438_v13, %v1440_v48 }
 0x6ae   : > { %v1449_v50 = vrot.slane %v1441_v45, %v3083_v41  ;;  %v1456_v51 = vrot.slane %v1442_v46, %v3083_v41 }
 0x6af   : > { %v1465_v54 = vrot.slane %v1457_v52, %v3083_v41  ;;  %v1472_v55 = vrot.slane %v1458_v53, %v3083_v41  ;;  %2150 = vmatpush3.bf16.msra.mxu0 %v2298_v40 }
 0x6b1   : > { %v1473_v37 = vcombine.low %v1449_v50, %v1465_v54  ;;  %v1474_v56 = vcombine.high %v1449_v50, %v1465_v54  ;;  %v1489_v57 = vcombine.low %v1456_v51, %v1472_v55  ;;  %v1490_v58 = vcombine.high %v1456_v51, %v1472_v55 }
 0x6b3   : > { %v1481_v59 = vrot.slane %v1473_v37, %v3085_v47  ;;  %v1488_v60 = vrot.slane %v1474_v56, %v3085_v47  ;;  %v1497_v61 = vrot.slane %v1489_v57, %v3085_v47  ;;  %v1504_v62 = vrot.slane %v1490_v58, %v3085_v47  ;;  %v2301_v37 = vld [vmem:[#allocation13 + $0x10] sm:$0xff]   ;;  %v2302_v56 = vld [vmem:[#allocation13 + $0x18] sm:$0xff]  }
 0x6b4   : > { %v2039_v57 = vld [vmem:[#allocation11] ss:$0 sm:$0xff] }
 0x6b5   : > { %v1509_v1 = vcombine.low %v1481_v59, %v1488_v60  ;;  %v2034_v2 = vcombine.high %v1481_v59, %v1488_v60  ;;  %v1525_v3 = vcombine.low %v1497_v61, %v1504_v62  ;;  %v2035_v4 = vcombine.high %v1497_v61, %v1504_v62 }
 0x6b7   : > { %v1516_v5 = vrot.slane %v1509_v1, %v3083_v41  ;;  %v1524_v42 = vrot.slane %v2034_v2, %v3083_v41  ;;  %v1532_v6 = vrot.slane %v1525_v3, %v3083_v41  ;;  %v1540_v29 = vrot.slane %v2035_v4, %v3083_v41  ;;  %v2043_v2 = vld [vmem:[#allocation14] ss:$0 sm:$0xff] }
 0x6b9   : > { %v1542_v7 = vcombine.high %v1516_v5, %v1524_v42  ;;  %v1558_v9 = vcombine.high %v1532_v6, %v1540_v29  ;;  %v1541_v10 = vcombine.low %v1516_v5, %v1524_v42  ;;  %v1557_v11 = vcombine.low %v1532_v6, %v1540_v29 }
 0x6bb   : > { %v1556_v12 = vrot.slane %v1542_v7, %v3085_v47  ;;  %v1572_v13 = vrot.slane %v1558_v9, %v3085_v47  ;;  %v1549_v14 = vrot.slane %v1541_v10, %v3085_v47  ;;  %v1565_v15 = vrot.slane %v1557_v11, %v3085_v47 }
 0x6bd   : > { %v1575_v16 = vcombine.low %v1556_v12, %v1572_v13  ;;  %v1574_v17 = vcombine.high %v1549_v14, %v1565_v15  ;;  %v1576_v18 = vcombine.high %v1556_v12, %v1572_v13  ;;  %v1573_v19 = vcombine.low %v1549_v14, %v1565_v15 }
 0x6bf   : > { %1582 = vrot.lane.b32.xlu1 %v1575_v16, %s2670_s2  ;;  %1578 = vrot.lane.b32.xlu0 %v1574_v17, %s2671_s25 }
 0x6c3   : > { %1586 = vrot.lane.b32.xlu1 %v1576_v18, %s2672_s20 }
 0x731   : > { %v1583_v41 = vpop.permute.xlu1 %1582  ;;  %v1579_v20 = vpop.permute.xlu0 %1578 }
 0x732   : > { %v1589_v21 = vsel %vm993_vm4, %v1573_v19, %v1579_v20 }
 0x733   : > { %v1591_v23 = vsel %vm1590_vm7, %v1589_v21, %v1583_v41 }
 0x735   : > { %v1587_v22 = vpop.permute.xlu1 %1586 }
 0x736   : > { %v1593_v24 = vsel %vm1592_vm8, %v1591_v23, %v1587_v22 }
 0x737   : > { %v1594_v47 = vpack.c.bf16 %v1593_v24, %v1593_v24 }
 0x739   : > { %2144 = vmatmul.mubr.msk.bf16.vlgmr.msra.gmra.mrb[16].mxu1 %vm443_vm0, %v1594_v47 }
 0x73a   : > { %2163 = vmatprep.mubr.msk.bf16.mxu1 %vm2662_vm1, %v2661_v8 }
 0x80c   : > { %v1648_v25 = vpop.f32.mrb[16].mxu1 }
 0x80d   : > { %v3241_v26 = vadd.f32 %v1648_v25, %v3053_v0  ;;  %v2145_v27 = vpop.f32.mrb[17].mxu1  ;;  %v2299_v0 = vld [vmem:[#allocation13] sm:$0xff]  }
 0x80e   : > { %v1651_v30 = vpop.f32.mrb[18].mxu1  ;;  %2156 = vmatpush3.bf16.msra.mxu1 %v2299_v0 }
 0x80f   : > { %v2146_v31 = vpop.f32.mrb[19].mxu1  ;;  %v1655_v32 = vsel %vm443_vm0, %v3241_v26, 0.0  ;;  %2157 = vmatprep.subr.bf16.mxu1 %v2661_v8 }
 0x810   : > { %1656 = vadd.xlane.f32.xlu0 %v1655_v32 }
 0x812   : > { %2158 = vmatpush3.bf16.msra.mxu1 %v2300_v43 }
 0x813   : > { %2159 = vmatprep.subr.bf16.mxu1 %v2661_v8 }
 0x816   : > { %2160 = vmatpush3.bf16.msra.mxu1 %v2301_v37 }
 0x817   : > { %2161 = vmatprep.subr.bf16.mxu1 %v2661_v8 }
 0x81a   : > { %2162 = vmatpush3.bf16.msra.mxu1 %v2302_v56 }
 0x89d   : > { %v1657_v33 = vpop.xlane.xlu0 %1656 }
 0x89e   : > { %v1658_v34 = vmul.f32 0.03125, %v1657_v33 }
 0x8a0   : > { %v1659_v35 = vsub.f32 %v3241_v26, %v1658_v34 }
 0x8a2   : > { %v1660_v38 = vmul.f32 %v1659_v35, %v1659_v35 }
 0x8a4   : > { %v1661_v39 = vsel %vm443_vm0, %v1660_v38, 0.0 }
 0x8a5   : > { %1662 = vadd.xlane.f32.xlu1 %v1661_v39 }
 0x932   : > { %v1663_v44 = vpop.xlane.xlu1 %1662 }
 0x933   : > { %v1664_v45 = vmul.f32 0.032258064, %v1663_v44 }
 0x935   : > { %2331 = vrsqrt.f32 %v1664_v45  ;;  %vm1667_vm9 = vcmp.eq.f32.partialorder %v1664_v45, inf  ;;  %v1670_v49 = vand.u32 2147483648, %v1664_v45  ;;  %vm1669_vm10 = vcmp.eq.f32.partialorder %v1664_v45, 0.0 }
 0x93f   : > { %v2332_v46 = vpop.eup %2331 }
 0x940   : > { %v1666_v48 = vmul.f32 %v2332_v46, %v1664_v45 }
 0x942   : > { %v1668_v50 = vsel %vm1667_vm9, %v1664_v45, %v1666_v48 }
 0x943   : > { %v1671_v51 = vsel %vm1669_vm10, %v1670_v49, %v1668_v50 }
 0x944   : > { %v1672_v52 = vadd.f32 1e-06, %v1671_v51 }
 0x946   : > { %2333 = vrcp.f32 %v1672_v52 }
 0x950   : > { %v2334_v53 = vpop.eup %2333 }
 0x951   : > { %v1674_v54 = vmul.f32 %v2334_v53, %v1659_v35 }
 0x953   : > { %v1675_v55 = vadd.f32 1.0, %v1674_v54 }
 0x955   : > { %v1676_v36 = vpack.c.bf16 %v1675_v55, %v1675_v55 }
 0x957   : > { %2152 = vmatmul.mubr.msk.bf16.vlgmr.msra.gmra.mrb[20].mxu0 %vm443_vm0, %v1676_v36 }
 0xa2a   : > { %v1737_v58 = vpop.f32.mrb[20].mxu0 }
 0xa2b   : > { %v1738_v59 = vadd.f32 %v2039_v57, %v1737_v58  ;;  %v2153_v60 = vpop.f32.mrb[21].mxu0 }
 0xa2c   : > { %v1740_v61 = vpop.f32.mrb[22].mxu0 }
 0xa2d   : > { %v1743_v62 = vmax.f32 %v1738_v59, 0.0  ;;  %v2154_v63 = vpop.f32.mrb[23].mxu0 }
 0xa2f   : > { %v1744_v1 = vpack.c.bf16 %v1743_v62, %v1743_v62 }
 0xa31   : > { %2164 = vmatmul.mubr.msk.bf16.vlgmr.msra.gmra.mrb[20].mxu1 %vm1784_vm11, %v1744_v1 }
 0xb04   : > { %v1822_v3 = vpop.f32.mrb[20].mxu1 }
 0xb05   : > { %v1823_v8 = vadd.f32 %v2043_v2, %v1822_v3  ;;  %v2165_v4 = vpop.f32.mrb[21].mxu1 }
 0xb06   : > { %v1825_v5 = vpop.f32.mrb[22].mxu1 }
 0xb07   : > { %v1828_v42 = vadd.f32 %v1823_v8, %v3241_v26  ;;  %v2166_v6 = vpop.f32.mrb[23].mxu1 }
 0xb09   : > { %1829 = vst.msk [vmem:[%s440_s18] sm:$0xff] %vm443_vm0, %v1828_v42 }
 0xb0a   : > { %2576 = shalt.err (!%p2573_p8)
}
 0xb0b   : > { %s2577_s4 = scalar_lea.hbm %s3259_s9, 128  ;;  %s2581_s17 = scalar_lea.hbm %s3312_s8, 256 }
 0xb0c   : > { %p2578_p9 = scmp.ne.s32.totalorder %s3259_s9, %s2577_s4  ;;  %p2582_p13 = scmp.lt.u32.totalorder %s3259_s9, %s3312_s8 }
 0xb0d   : > { %p2583_p0 = scmp.lt.u32.totalorder %s2581_s17, %s2577_s4  ;;  %p2585_p4 = scmp.lt.u32.totalorder %s2577_s4, %s3259_s9 }
 0xb0e   : > { %p2579_p12 = pnand %p2578_p9, %p3350_p10 }
 0xb0f   : > { %p2584_p2 = por %p2583_p0, %p2582_p13 }
 0xb10   : > { %p2580_p1 = pneg %p2579_p12 }
 0xb11   : > { %p2586_p5 = por %p2585_p4, %p2584_p2 }
 0xb13   : > { %p2587_p7 = pnand %p2586_p5, %p2580_p1 }
 0xb15   : > { %2590 = shalt.err (!%p2587_p7)
}
 0xb16   : > { %2195 = dma.vmem_to_hbm [thread:$0]  (%p3350_p10), %s3261_s23, 128, %s3259_s9, %s1831_s11  }
 0xb17 PF: > { %s1856_s20 = sand.u32 1, %s2637_s27   ;;  %p3351_p3 = scmp.ne.s32.totalorder %s3334_s10, 0 }
 0xb18   : > { %p3352_p6 = scmp.ge.s32.totalorder %s2649_s30, 2  ;;  %s1857_s19 = scalar_lea.sflag [#allocation4], %s1856_s20 }
 0xb1a   : > { %p2224_p11 = pnand %p3352_p6, %p3351_p3 }
 0xb1c   : > { %2632 = dma.done.wait (!%p2224_p11), %s1857_s19, 128  }
 0xb1d   : > { %2634 = vsyncadd (!%p2224_p11), %s1857_s19, 4294967168  ;;  %p27_p8 = scmp.ge.s32.totalorder %s2908_s15, 4   ;;  %s3353_s27 = smov %s2641_s28 }
 0xb1e   : > { %s3354_s28 = smov %s2645_s29  ;;  %s3355_s29 = smov %s2919_s24 }
 0xb1f   : > { %s3356_s30 = smov %s2908_s15  ;;  %29 = sbr.rel (!%p27_p8) target bundleno = 15 (0xf), region = 134 }
 0xb26   :  { %1862 = vsyncpa [#allocation3], 1 }
 0xb27   :  { %1864 = vsyncpa [#allocation3 + $0x1], 1 }
 0xb28   :  { %1865 = vsyncpa [#allocation6], 1 }
 0xb29   :  { %1867 = vsyncpa [#allocation6 + $0x1], 1 }
 0xb2a   :  { %1868 = vsyncpa [#allocation9], 1 }
 0xb2b   :  { %1869 = vsyncpa [#allocation12], 1 }
 0xb2c   :  { %1870 = vsyncpa [#allocation15], 1 }
 0xb2d   :  { %1871 = vsyncpa [#allocation4], 1 }
 0xb2e   :  { %1873 = vsyncpa [#allocation4 + $0x1], 1 }

// kernel: tpu_custom_call.1
= control target key start
LH: loop header
LB: loop body
LE: loop exit
PB: predicated region body
PF: predicated region fallthrough
CT: control target
= control target key end

     0   :  { %s2659_s0 = inlined_call_operand.hbm [shape: f32[16,32], index: 0, kind: input, shape index: {}]   ;;  %s2660_s1 = inlined_call_operand.hbm [shape: s8[2,8,8], index: 1, kind: input, shape index: {}]   ;;  %s2661_s2 = inlined_call_operand.hbm [shape: bf16[32,96], index: 2, kind: input, shape index: {}]   ;;  %s2662_s3 = inlined_call_operand.hbm [shape: bf16[32,32], index: 3, kind: input, shape index: {}]   ;;  %s2663_s4 = inlined_call_operand.hbm [shape: bf16[32,64], index: 4, kind: input, shape index: {}]   ;;  %s2664_s5 = inlined_call_operand.hbm [shape: f32[1,64], index: 5, kind: input, shape index: {}]   ;;  %s2665_s6 = inlined_call_operand.hbm [shape: bf16[64,32], index: 6, kind: input, shape index: {}]   ;;  %s2666_s7 = inlined_call_operand.hbm [shape: f32[1,32], index: 7, kind: input, shape index: {}]   ;;  %s2667_s8 = inlined_call_operand.hbm [shape: f32[16,32], index: 8, kind: output, shape index: {}]  }
   0x1   :  { %2674 = sst [smem:[#allocation24_spill]] %s2659_s0 }
   0x2   :  { %2675 = sst [smem:[#allocation25_spill]] %s2661_s2 }
   0x3   :  { %2676 = sst [smem:[#allocation26_spill]] %s2662_s3 }
   0x4   :  { %2677 = sst [smem:[#allocation27_spill]] %s2663_s4 }
   0x5   :  { %13 = vsyncpa [#allocation3], 0 }
   0x6   :  { %15 = vsyncpa [#allocation3 + $0x1], 0 }
   0x7   :  { %16 = vsyncpa [#allocation6], 0 }
   0x8   :  { %18 = vsyncpa [#allocation6 + $0x1], 0 }
   0x9   :  { %19 = vsyncpa [#allocation9], 0 }
   0xa   :  { %20 = vsyncpa [#allocation12], 0 }
   0xb   :  { %21 = vsyncpa [#allocation15], 0 }
   0xc   :  { %22 = vsyncpa [#allocation4], 0 }
   0xd   :  { %24 = vsyncpa [#allocation4 + $0x1], 0  ;;  %s2158_s27 = smov 0   ;;  %s2160_s28 = smov 0  }
   0xe   :  { %s2162_s29 = smov 0   ;;  %s2164_s30 = smov 0  }
   0xf LB: > { %s2092_s9 = smov [#allocation7]   ;;  %s2179_s11 = sadd.s32 4294967295, %s2090_s30   ;;  %s2090_s30 = sphi %s2164_s30, %s2711_s30   ;;  %s2086_s29 = sphi %s2162_s29, %s2710_s29   ;;  %s2082_s28 = sphi %s2160_s28, %s2709_s28   ;;  %s2078_s27 = sphi %s2158_s27, %s2708_s27  }
  0x10   : > { %s251_s10 = sshll.u32 %s2092_s9, 4  ;;  %p1446_p0 = scmp.ge.s32.totalorder %s2090_s30, 1  ;;  %s2184_s10 = int_to_ptr.vmem [resolvable:$true] %s251_s10 }
  0x11   : > { %p2670_p1 = scmp.eq.s32.totalorder %s2179_s11, 0  ;;  %p239_p2 = scmp.lt.s32.totalorder %s2090_s30, 3 }
  0x12   : > { %s2093_s13 = smov [#allocation8]   ;;  %s2094_s16 = smov [#allocation11]  }
  0x13   : > { %p2186_p3 = pnand %p1446_p0, %p239_p2  ;;  %s264_s14 = sshll.u32 %s2093_s13, 4  ;;  %s2199_s14 = int_to_ptr.vmem [resolvable:$true] %s264_s14 }
  0x14   : > { %s291_s17 = sshll.u32 %s2094_s16, 4  ;;  %s2680_s2 = sld [smem:[#allocation25_spill]]  ;;  %s2201_s17 = int_to_ptr.vmem [resolvable:$true] %s291_s17 }
  0x15   : > { %s2678_s12 = scalar_select %p2186_p3, 1, 0 }
  0x16   : > { %p1640_p5 = pneg %p2186_p3 }
  0x18   : > { %p2195_p6 = pnand %p1640_p5, %p2670_p1 }
  0x1a   : > { %s1776_s20 = scalar_lea.hbm %s2680_s2, 256  ;;  %p2211_p8 = pneg %p2195_p6 }
  0x1b   : > { %p1777_p7 = scmp.ne.s32.totalorder %s2680_s2, %s1776_s20  ;;  %p1783_p11 = scmp.lt.u32.totalorder %s1776_s20, %s2680_s2 }
  0x1d   : > { %p1779_p9 = pnand %p2211_p8, %p1777_p7 }
  0x1f   : > { %p1780_p10 = pneg %p1779_p9 }
  0x21   : > { %p1785_p12 = pnand %p1783_p11, %p1780_p10 }
  0x23   : > { %1788 = shalt.err (!%p1785_p12)
}
  0x24   : > { %s1789_s26 = scalar_lea.vmem %s2184_s10, 256  ;;  %p1797_p5 = scmp.lt.s32.totalorder %s2184_s10, %s2184_s10 }
  0x25   : > { %p1790_p13 = scmp.ne.s32.totalorder %s2184_s10, %s1789_s26  ;;  %p1798_p4 = scmp.lt.s32.totalorder %s1789_s26, %s1789_s26 }
  0x27   : > { %p1792_p0 = pnand %p1790_p13, %p2211_p8  ;;  %p1799_p7 = por %p1798_p4, %p1797_p5 }
  0x29   : > { %p1793_p2 = pneg %p1792_p0 }
  0x2b   : > { %p1800_p9 = pnand %p1799_p7, %p1793_p2 }
  0x2d   : > { %1803 = shalt.err (!%p1800_p9)
}
  0x2e   : > { %s2668_s9 = smov 64   ;;  %s2096_s13 = smov 4  }
  0x2f   : > { %1643 = dma.hbm_to_vmem [thread:$0]  (!%p2195_p6), %s2680_s2, 256, %s2184_s10, [#allocation6], %s2668_s9, %s2668_s9, %s2096_s13  }
  0x30   : > { %s2682_s3 = sld [smem:[#allocation26_spill]] }
  0x36   : > { %s1804_s21 = scalar_lea.hbm %s2682_s3, 256 }
  0x37   : > { %p1805_p4 = scmp.ne.s32.totalorder %s2682_s3, %s1804_s21  ;;  %p1811_p12 = scmp.lt.u32.totalorder %s1804_s21, %s2682_s3 }
  0x39   : > { %p1807_p10 = pnand %p1805_p4, %p2211_p8 }
  0x3b   : > { %p1808_p11 = pneg %p1807_p10 }
  0x3d   : > { %p1813_p13 = pnand %p1811_p12, %p1808_p11 }
  0x3f   : > { %1816 = shalt.err (!%p1813_p13)
}
  0x40   : > { %s1817_s10 = scalar_lea.vmem %s2199_s14, 256  ;;  %p1825_p7 = scmp.lt.s32.totalorder %s2199_s14, %s2199_s14 }
  0x41   : > { %p1818_p0 = scmp.ne.s32.totalorder %s2199_s14, %s1817_s10  ;;  %p1826_p9 = scmp.lt.s32.totalorder %s1817_s10, %s1817_s10 }
  0x43   : > { %p1820_p2 = pnand %p1818_p0, %p2211_p8  ;;  %p1827_p4 = por %p1826_p9, %p1825_p7 }
  0x45   : > { %p1821_p5 = pneg %p1820_p2 }
  0x47   : > { %p1828_p10 = pnand %p1827_p4, %p1821_p5 }
  0x49   : > { %1831 = shalt.err (!%p1828_p10)
}
  0x4a   : > { %1646 = dma.hbm_to_vmem [thread:$0]  (!%p2195_p6), %s2682_s3, 256, %s2199_s14, [#allocation9], %s2668_s9, %s2668_s9, %s2096_s13  }
  0x4b   : > { %s1832_s21 = scalar_lea.hbm %s2664_s5, 16 }
  0x4c   : > { %p1833_p11 = scmp.ne.s32.totalorder %s2664_s5, %s1832_s21  ;;  %p1839_p0 = scmp.lt.u32.totalorder %s1832_s21, %s2664_s5 }
  0x4e   : > { %p1835_p12 = pnand %p1833_p11, %p2211_p8 }
  0x50   : > { %p1836_p13 = pneg %p1835_p12 }
  0x52   : > { %p1841_p2 = pnand %p1839_p0, %p1836_p13 }
  0x54   : > { %1844 = shalt.err (!%p1841_p2)
}
  0x55   : > { %s1845_s14 = scalar_lea.vmem %s2201_s17, 16  ;;  %s1852_s10 = scalar_lea.vmem %s2201_s17, 32 }
  0x56   : > { %p1846_p5 = scmp.ne.s32.totalorder %s2201_s17, %s1845_s14  ;;  %p1853_p4 = scmp.lt.s32.totalorder %s2201_s17, %s2201_s17 }
  0x57   : > { %p1854_p10 = scmp.lt.s32.totalorder %s1852_s10, %s1845_s14 }
  0x58   : > { %p1848_p7 = pnand %p1846_p5, %p2211_p8 }
  0x59   : > { %p1855_p11 = por %p1854_p10, %p1853_p4 }
  0x5a   : > { %p1849_p9 = pneg %p1848_p7 }
  0x5c   : > { %p1856_p12 = pnand %p1855_p11, %p1849_p9 }
  0x5e   : > { %1859 = shalt.err (!%p1856_p12)
}
  0x5f   : > { %1652 = dma.hbm_to_vmem [thread:$0]  (!%p2195_p6), %s2664_s5, 16, %s2201_s17, [#allocation12]  }
  0x60   : > { %s2097_s19 = smov [#allocation10]   ;;  %s2098_s21 = smov [#allocation13]  }
  0x61   : > { %s277_s20 = sshll.u32 %s2097_s19, 4  ;;  %s301_s22 = sshll.u32 %s2098_s21, 4  ;;  %s278_s20 = int_to_ptr.vmem [resolvable:$true] %s277_s20  ;;  %s302_s22 = int_to_ptr.vmem [resolvable:$true] %s301_s22 }
  0x62   : > { %s2683_s4 = sld [smem:[#allocation27_spill]] }
  0x68   : > { %s1860_s26 = scalar_lea.hbm %s2683_s4, 256 }
  0x69   : > { %p1861_p13 = scmp.ne.s32.totalorder %s2683_s4, %s1860_s26  ;;  %p1867_p5 = scmp.lt.u32.totalorder %s1860_s26, %s2683_s4 }
  0x6b   : > { %p1863_p0 = pnand %p1861_p13, %p2211_p8 }
  0x6d   : > { %p1864_p2 = pneg %p1863_p0 }
  0x6f   : > { %p1869_p7 = pnand %p1867_p5, %p1864_p2 }
  0x71   : > { %1872 = shalt.err (!%p1869_p7)
}
  0x72   : > { %s1873_s17 = scalar_lea.vmem %s278_s20, 256  ;;  %p1881_p11 = scmp.lt.s32.totalorder %s278_s20, %s278_s20 }
  0x73   : > { %p1874_p9 = scmp.ne.s32.totalorder %s278_s20, %s1873_s17  ;;  %p1882_p12 = scmp.lt.s32.totalorder %s1873_s17, %s1873_s17 }
  0x75   : > { %p1876_p4 = pnand %p1874_p9, %p2211_p8  ;;  %p1883_p1 = por %p1882_p12, %p1881_p11 }
  0x77   : > { %p1877_p10 = pneg %p1876_p4 }
  0x79   : > { %p1884_p3 = pnand %p1883_p1, %p1877_p10 }
  0x7b   : > { %1887 = shalt.err (!%p1884_p3)
}
  0x7c   : > { %s2684_s18 = smov 64   ;;  %s1888_s25 = scalar_lea.hbm %s2665_s6, 512 }
  0x7d   : > { %1649 = dma.hbm_to_vmem [thread:$0]  (!%p2195_p6), %s2683_s4, 256, %s278_s20, [#allocation9], %s2684_s18, %s2684_s18, %s2096_s13  }
  0x7e   : > { %p1889_p1 = scmp.ne.s32.totalorder %s2665_s6, %s1888_s25  ;;  %p1895_p0 = scmp.lt.u32.totalorder %s1888_s25, %s2665_s6 }
  0x80   : > { %p1891_p3 = pnand %p1889_p1, %p2211_p8 }
  0x82   : > { %p1892_p13 = pneg %p1891_p3 }
  0x84   : > { %p1897_p2 = pnand %p1895_p0, %p1892_p13 }
  0x86   : > { %1900 = shalt.err (!%p1897_p2)
}
  0x87   : > { %s1901_s17 = scalar_lea.vmem %s302_s22, 512  ;;  %p1909_p4 = scmp.lt.s32.totalorder %s302_s22, %s302_s22 }
  0x88   : > { %p1902_p5 = scmp.ne.s32.totalorder %s302_s22, %s1901_s17  ;;  %p1910_p10 = scmp.lt.s32.totalorder %s1901_s17, %s1901_s17 }
  0x8a   : > { %p1904_p7 = pnand %p1902_p5, %p2211_p8  ;;  %p1911_p11 = por %p1910_p10, %p1909_p4 }
  0x8c   : > { %p1905_p9 = pneg %p1904_p7 }
  0x8e   : > { %p1912_p12 = pnand %p1911_p11, %p1905_p9 }
  0x90   : > { %1915 = shalt.err (!%p1912_p12)
}
  0x91   : > { %1655 = dma.hbm_to_vmem [thread:$0]  (!%p2195_p6), %s2665_s6, 512, %s302_s22, [#allocation12], %s2684_s18, %s2684_s18, %s2096_s13  }
  0x92   : > { %s2099_s19 = smov [#allocation14]   ;;  %s1916_s26 = scalar_lea.hbm %s2666_s7, 16 }
  0x93   : > { %s315_s21 = sshll.u32 %s2099_s19, 4  ;;  %p1917_p1 = scmp.ne.s32.totalorder %s2666_s7, %s1916_s26  ;;  %s316_s21 = int_to_ptr.vmem [resolvable:$true] %s315_s21 }
  0x94   : > { %p1923_p0 = scmp.lt.u32.totalorder %s1916_s26, %s2666_s7 }
  0x95   : > { %p1919_p3 = pnand %p1917_p1, %p2211_p8 }
  0x97   : > { %p1920_p13 = pneg %p1919_p3 }
  0x99   : > { %p1925_p2 = pnand %p1923_p0, %p1920_p13 }
  0x9b   : > { %1928 = shalt.err (!%p1925_p2)
}
  0x9c   : > { %s1929_s13 = scalar_lea.vmem %s316_s21, 16  ;;  %s1936_s22 = scalar_lea.vmem %s316_s21, 32 }
  0x9d   : > { %p1930_p5 = scmp.ne.s32.totalorder %s316_s21, %s1929_s13  ;;  %p1937_p4 = scmp.lt.s32.totalorder %s316_s21, %s316_s21 }
  0x9e   : > { %p1938_p10 = scmp.lt.s32.totalorder %s1936_s22, %s1929_s13 }
  0x9f   : > { %p1932_p7 = pnand %p1930_p5, %p2211_p8 }
  0xa0   : > { %p1939_p11 = por %p1938_p10, %p1937_p4 }
  0xa1   : > { %p1933_p9 = pneg %p1932_p7 }
  0xa3   : > { %p1940_p12 = pnand %p1939_p11, %p1933_p9 }
  0xa5   : > { %1943 = shalt.err (!%p1940_p12)
}
  0xa6   : > { %1658 = dma.hbm_to_vmem [thread:$0]  (!%p2195_p6), %s2666_s7, 16, %s316_s21, [#allocation15]  }
  0xa7   : > { %s1445_s23 = sadd.s32 4294967294, %s2090_s30   ;;  %s2347_s15 = sadd.s32 1, %s2090_s30  }
  0xa8   : > { %s34_s9 = ssub.s32 %s2090_s30, %s2347_s15  ;;  %s37_s19 = sadd.s32 1, %s2086_s29 }
  0xa9   : > { %p35_p8 = scmp.eq.s32.totalorder %s34_s9, 0  ;;  %p44_p1 = scmp.ne.s32.totalorder %s2086_s29, %s2082_s28 }
  0xaa   : > { %p45_p3 = scmp.eq.s32.totalorder %s2090_s30, 0  ;;  %p50_p13 = scmp.ne.s32.totalorder %s2082_s28, %s2078_s27 }
  0xab   : > { %s2358_s24 = scalar_select %p35_p8, %s2086_s29, %s37_s19  }
  0xac   : > { %p2360_p0 = por %p45_p3, %p44_p1  ;;  %p2686_p2 = scmp.eq.s32.totalorder %s2179_s11, 0 }
  0xad   : > { %p226_p5 = scmp.eq.s32.totalorder %s2179_s11, 1  ;;  %p232_p7 = scmp.eq.s32.totalorder %s1445_s23, 1 }
  0xae   : > { %p2366_p6 = por %p2686_p2, %p50_p13  ;;  %p1676_p9 = scmp.lt.s32.totalorder %s2090_s30, 2 }
  0xaf   : > { %s2373_s26 = sand.u32 1, %s2086_s29   ;;  %p2375_p4 = por %p226_p5, %p44_p1 }
  0xb0   : > { %s2687_s21 = scalar_select %p2366_p6, 1, 0 }
  0xb1   : > { %s2688_s14 = scalar_select %p2375_p4, 1, 0 }
  0xb2   : > { %p2379_p10 = por %p232_p7, %p50_p13  ;;  %s1454_s16 = sshll.u32 %s2373_s26, 3 }
  0xb3   : > { %s1455_s17 = sshll.u32 %s2090_s30, 7  ;;  %s2690_s0 = sld [smem:[#allocation24_spill]] }
  0xb4   : > { %s2689_s10 = scalar_select %p2379_p10, 1, 0 }
  0xb5   : > { %s330_s20 = scalar_lea.vmem [#allocation2], %s1454_s16  ;;  %p2394_p11 = pnand %p1676_p9, %p2360_p0 }
  0xb6   : > { %s337_s23 = sshll.u32 %s330_s20, 4  ;;  %s1456_s2 = sshll.u32 %s2373_s26, 1  ;;  %s2390_s23 = int_to_ptr.vmem [resolvable:$true] %s337_s23 }
  0xb7   : > { %s327_s13 = scalar_lea.sflag [#allocation3], %s2373_s26  ;;  %p1946_p8 = pneg %p2394_p11 }
  0xb9   : > { %s2388_s18 = scalar_lea.hbm %s2690_s0, %s1455_s17  ;;  %s1949_s25 = scalar_lea.hbm %s2690_s0, 256 }
  0xba   : > { %s1944_s17 = scalar_lea.hbm %s2388_s18, 128  ;;  %p1950_p13 = scmp.lt.u32.totalorder %s2388_s18, %s2690_s0 }
  0xbb   : > { %p1945_p12 = scmp.ne.s32.totalorder %s2388_s18, %s1944_s17  ;;  %p1951_p0 = scmp.lt.u32.totalorder %s1949_s25, %s1944_s17 }
  0xbc   : > { %p1953_p5 = scmp.lt.u32.totalorder %s1944_s17, %s2388_s18 }
  0xbd   : > { %p1947_p1 = pnand %p1946_p8, %p1945_p12  ;;  %p1952_p2 = por %p1951_p0, %p1950_p13 }
  0xbf   : > { %p1948_p3 = pneg %p1947_p1  ;;  %p1954_p7 = por %p1953_p5, %p1952_p2 }
  0xc1   : > { %p1955_p9 = pnand %p1954_p7, %p1948_p3 }
  0xc3   : > { %1958 = shalt.err (!%p1955_p9)
}
  0xc4   : > { %s1959_s19 = scalar_lea.vmem %s2390_s23, 128  ;;  %s2100_s16 = smov [#allocation2]  }
  0xc5   : > { %p1960_p12 = scmp.ne.s32.totalorder %s2390_s23, %s1959_s19  ;;  %s1964_s22 = sshll.u32 %s2100_s16, 4  ;;  %s1965_s22 = int_to_ptr.vmem [resolvable:$false] %s1964_s22 }
  0xc6   : > { %s1966_s3 = scalar_lea.vmem %s1965_s22, 256  ;;  %p1967_p4 = scmp.lt.s32.totalorder %s2390_s23, %s1965_s22 }
  0xc7   : > { %p1962_p1 = pnand %p1960_p12, %p1946_p8  ;;  %p1968_p13 = scmp.lt.s32.totalorder %s1966_s3, %s1959_s19 }
  0xc9   : > { %p1963_p10 = pneg %p1962_p1  ;;  %p1969_p0 = por %p1968_p13, %p1967_p4 }
  0xcb   : > { %p1970_p2 = pnand %p1969_p0, %p1963_p10 }
  0xcd   : > { %1973 = shalt.err (!%p1970_p2)
}
  0xce   : > { %1662 = dma.hbm_to_vmem [thread:$0]  (!%p2394_p11), %s2388_s18, 128, %s2390_s23, %s327_s13  }
  0xcf   : > { %s1457_s17 = sshll.u32 %s2090_s30, 5  ;;  %s348_s19 = scalar_lea.vmem [#allocation5], %s1456_s2 }
  0xd0   : > { %s2430_s16 = scalar_lea.hbm %s2660_s1, %s1457_s17  ;;  %s355_s22 = sshll.u32 %s348_s19, 4  ;;  %s356_s22 = int_to_ptr.vmem [resolvable:$true] %s355_s22 }
  0xd1   : > { %s2692_s3 = sand.u32 1, %s2090_s30   ;;  %s1974_s4 = scalar_lea.hbm %s2430_s16, 32 }
  0xd2   : > { %s345_s0 = scalar_lea.sflag [#allocation6], %s2692_s3  ;;  %p1975_p4 = scmp.ne.s32.totalorder %s2430_s16, %s1974_s4 }
  0xd3   : > { %s1979_s13 = scalar_lea.hbm %s2660_s1, 64  ;;  %p1980_p5 = scmp.lt.u32.totalorder %s2430_s16, %s2660_s1 }
  0xd4   : > { %p1977_p10 = pnand %p1975_p4, %p1946_p8  ;;  %p1981_p7 = scmp.lt.u32.totalorder %s1979_s13, %s1974_s4 }
  0xd5   : > { %p1983_p12 = scmp.lt.u32.totalorder %s1974_s4, %s2430_s16 }
  0xd6   : > { %p1978_p3 = pneg %p1977_p10  ;;  %p1982_p9 = por %p1981_p7, %p1980_p5 }
  0xd8   : > { %p1984_p1 = por %p1983_p12, %p1982_p9 }
  0xda   : > { %p1985_p13 = pnand %p1984_p1, %p1978_p3 }
  0xdc   : > { %1988 = shalt.err (!%p1985_p13)
}
  0xdd   : > { %s1989_s2 = scalar_lea.vmem %s356_s22, 32  ;;  %s2101_s25 = smov [#allocation5]  }
  0xde   : > { %p1990_p0 = scmp.ne.s32.totalorder %s356_s22, %s1989_s2  ;;  %s1994_s20 = sshll.u32 %s2101_s25, 4  ;;  %s1995_s20 = int_to_ptr.vmem [resolvable:$false] %s1994_s20 }
  0xdf   : > { %s1996_s19 = scalar_lea.vmem %s1995_s20, 64  ;;  %p1997_p10 = scmp.lt.s32.totalorder %s356_s22, %s1995_s20 }
  0xe0   : > { %p1992_p2 = pnand %p1990_p0, %p1946_p8  ;;  %p1998_p6 = scmp.lt.s32.totalorder %s1996_s19, %s1989_s2 }
  0xe2   : > { %p1993_p4 = pneg %p1992_p2  ;;  %p1999_p5 = por %p1998_p6, %p1997_p10 }
  0xe4   : > { %p2000_p7 = pnand %p1999_p5, %p1993_p4 }
  0xe6   : > { %2003 = shalt.err (!%p2000_p7)
}
  0xe7   : > { %1665 = dma.hbm_to_vmem [thread:$0]  (!%p2394_p11), %s2430_s16, 32, %s356_s22, %s345_s0  }
  0xe8   : > { %p2693_p3 = scmp.ne.s32.totalorder %s2678_s12, 0 }
  0xe9   : > { %s2458_s4 = sand.u32 (!%p2693_p3), 1, %s2082_s28   ;;  %p2694_p6 = scmp.ne.s32.totalorder (!%p2693_p3), %s2687_s21, 0 }
  0xea   : > { %364 = sbr.rel (%p2693_p3) target bundleno = 2746 (0xaba), region = 52  ;;  %s1459_s3 = sshll.u32 (!%p2693_p3), %s2458_s4, 3 }
  0xeb   : > { %s367_s18 = scalar_lea.sflag (!%p2693_p3), [#allocation3], %s2458_s4  ;;  %s370_s23 = scalar_lea.vmem (!%p2693_p3), [#allocation2], %s1459_s3 }
  0xf1   : > { %2049 = dma.done.wait (%p2694_p6), %s367_s18, 128  }
  0xf2   : > { %2051 = vsyncadd (%p2694_p6), %s367_s18, 4294967168  ;;  %s375_s0 = sand.u32 1, %s2179_s11   ;;  %s1460_s12 = sshll.u32 %s2458_s4, 1 }
  0xf3   : > { %s376_s9 = scalar_lea.sflag [#allocation6], %s375_s0  ;;  %s2470_s16 = scalar_lea.vmem [#allocation5], %s1460_s12 }
  0xf4   : > { %2053 = dma.done.wait (%p2694_p6), %s376_s9, 32  }
  0xf5   : > { %2055 = vsyncadd (%p2694_p6), %s376_s9, 4294967264  ;;  %p2695_p11 = scmp.eq.s32.totalorder %s2179_s11, 0 }
  0xf7   : > { %2057 = dma.done.wait (%p2695_p11), [#allocation6], 256   ;;  %p2696_p8 = pmov %p2695_p11 }
  0xf9   : > { %2059 = vsyncadd (%p2696_p8), [#allocation6], 4294967040  ;;  %p2697_p9 = pmov %p2696_p8 }
  0xfa   : > { %p2698_p12 = pmov %p2696_p8 }
  0xfb   : > { %2061 = dma.done.wait (%p2697_p9), [#allocation9], 512  }
  0xfc   : > { %2063 = vsyncadd (%p2698_p12), [#allocation9], 4294966784  ;;  %p2699_p1 = pmov %p2696_p8 }
  0xfe   : > { %2065 = dma.done.wait (%p2699_p1), [#allocation12], 528   ;;  %p2700_p13 = pmov %p2699_p1 }
  0xff   : > { %p2701_p0 = pmov %p2699_p1 }
 0x100   : > { %2067 = vsyncadd (%p2700_p13), [#allocation12], 4294966768 }
 0x101   : > { %2069 = dma.done.wait (%p2701_p0), [#allocation15], 16   ;;  %p2702_p2 = pmov %p2701_p0 }
 0x102   : > { %vm443_vm0 = vcmask 261120   ;;  %v2492_v0 = vld [vmem:[%s370_s23] sm:$0xff]  ;;  %v1734_v7 = vld [vmem:[#allocation7] sm:$0xff]   ;;  %v2102_v8 = vmov 0.0   ;;  %vm2103_vm1 = vmmov 0   ;;  %s2104_s21 = smov 104  }
 0x103   : > { %2071 = vsyncadd (%p2702_p2), [#allocation15], 4294967280  ;;  %v444_v1 = vsel %vm443_vm0, %v2492_v0, 0.0  ;;  %1526 = vmatprep.subr.bf16.mxu0 %v2102_v8  ;;  %1530 = vmatprep.mubr.msk.bf16.mxu0 %vm2103_vm1, %v2102_v8  ;;  %v1735_v9 = vld [vmem:[#allocation7 + $0x8] sm:$0xff]   ;;  %s2105_s22 = smov 120   ;;  %s2106_s13 = smov 112  }
 0x104   : > { %445 = vadd.xlane.f32.xlu0 %v444_v1  ;;  %1527 = vmatpush3.bf16.msra.mxu0 %v1734_v7  ;;  %s2107_s26 = smov 96   ;;  %s2108_s17 = smov 64   ;;  %vm563_vm4 = vcmask 64512   ;;  %vm828_vm5 = vcmask 1043456   ;;  %v557_v53 = vld [vmem:[%s2470_s16] sm:$0x3] }
 0x105   : > { %1534 = vmatprep.subr.bf16.mxu1 %v2102_v8  ;;  %1528 = vmatprep.subr.bf16.mxu0 %v2102_v8  ;;  %v558_v54 = vunpack.c.0.s8 %v557_v53  ;;  %s2109_s2 = smov 8   ;;  %s2110_s25 = smov 16   ;;  %vm1041_vm7 = vcmask 130048   ;;  %vm1043_vm8 = vcmask 195584   ;;  %vm1235_vm11 = vcmask 523264  }
 0x106   : > { %1536 = vmatprep.mubr.msk.bf16.mxu1 %vm2103_vm1, %v2102_v8  ;;  %s2111_s20 = smov 24   ;;  %s1493_s19 = sshll.u32 %s2179_s11, 7 }
 0x107   : > { %vm2542_vm6 = vcmp.ne.s32.totalorder %v558_v54, 0  ;;  %s440_s18 = scalar_lea.vmem [#allocation16], %s1459_s3  ;;  %s2614_s9 = scalar_lea.hbm %s2667_s8, %s1493_s19 }
 0x108   : > { %1529 = vmatpush3.bf16.msra.mxu0 %v1735_v9  ;;  %s1295_s23 = sshll.u32 %s440_s18, 4  ;;  %s1282_s11 = scalar_lea.sflag [#allocation4], %s2458_s4  ;;  %s2616_s23 = int_to_ptr.vmem [resolvable:$true] %s1295_s23 }
 0x109   : > { %1540 = vmatprep.subr.bf16.mxu0 %v2102_v8  ;;  %s2004_s3 = scalar_lea.vmem %s2616_s23, 128  ;;  %p2705_p10 = scmp.ne.s32.totalorder %s2688_s14, 0 }
 0x10a   : > { %p2005_p4 = scmp.ne.s32.totalorder %s2616_s23, %s2004_s3  ;;  %s2112_s16 = smov [#allocation16]  }
 0x10c   : > { %p2006_p5 = pnand %p2005_p4, %p2705_p10 }
 0x10e   : > { %p2007_p7 = pneg %p2006_p5 }
 0x191   : > { %v446_v2 = vpop.xlane.xlu0 %445 }
 0x192   : > { %v448_v3 = vmul.f32 0.03125, %v446_v2 }
 0x194   : > { %v449_v4 = vsub.f32 %v2492_v0, %v448_v3 }
 0x196   : > { %v450_v5 = vmul.f32 %v449_v4, %v449_v4 }
 0x198   : > { %v451_v6 = vsel %vm443_vm0, %v450_v5, 0.0 }
 0x199   : > { %452 = vadd.xlane.f32.xlu0 %v451_v6 }
 0x226   : > { %v453_v10 = vpop.xlane.xlu0 %452 }
 0x227   : > { %v455_v11 = vmul.f32 0.032258064, %v453_v10 }
 0x229   : > { %1744 = vrsqrt.f32 %v455_v11  ;;  %vm458_vm2 = vcmp.eq.f32.partialorder %v455_v11, inf  ;;  %v461_v14 = vand.u32 2147483648, %v455_v11  ;;  %vm460_vm3 = vcmp.eq.f32.partialorder %v455_v11, 0.0 }
 0x233   : > { %v1745_v12 = vpop.eup %1744 }
 0x234   : > { %v457_v13 = vmul.f32 %v1745_v12, %v455_v11 }
 0x236   : > { %v459_v15 = vsel %vm458_vm2, %v455_v11, %v457_v13 }
 0x237   : > { %v462_v16 = vsel %vm460_vm3, %v461_v14, %v459_v15 }
 0x238   : > { %v463_v17 = vadd.f32 1e-06, %v462_v16 }
 0x23a   : > { %1746 = vrcp.f32 %v463_v17 }
 0x244   : > { %v1747_v18 = vpop.eup %1746 }
 0x245   : > { %v466_v19 = vmul.f32 %v1747_v18, %v449_v4 }
 0x247   : > { %v467_v20 = vadd.f32 1.0, %v466_v19 }
 0x249   : > { %v468_v21 = vpack.c.bf16 %v467_v20, %v467_v20 }
 0x24b   : > { %1531 = vmatmul.mubr.msk.bf16.vlgmr.msra.gmra.mrb[0].mxu0 %vm443_vm0, %v468_v21 }
 0x24c   : > { %1542 = vmatprep.mubr.msk.bf16.mxu0 %vm2103_vm1, %v2102_v8 }
 0x31e   : > { %v522_v22 = vpop.f32.mrb[0].mxu0 }
 0x31f   : > { %550 = vrot.lane.b32.xlu0 %v522_v22, %s2104_s21  ;;  %544 = vrot.lane.b32.xlu1 %v522_v22, %s2105_s22  ;;  %v1532_v23 = vpop.f32.mrb[1].mxu0  ;;  %v528_v26 = vmul.f32 0.35355338, %v522_v22  ;;  %v553_v27 = vpack.c.bf16 %v522_v22, %v522_v22 }
 0x320   : > { %v525_v24 = vpop.f32.mrb[2].mxu0 }
 0x321   : > { %v1533_v25 = vpop.f32.mrb[3].mxu0  ;;  %v539_v36 = vpack.c.bf16 %v528_v26, %v528_v26 }
 0x323   : > { %547 = vrot.lane.b32.xlu1 %v522_v22, %s2106_s13  ;;  %536 = vrot.lane.b32.xlu0 %v528_v26, %s2104_s21  ;;  %s2008_s21 = sshll.u32 %s2112_s16, 4  ;;  %s2009_s21 = int_to_ptr.vmem [resolvable:$false] %s2008_s21 }
 0x324   : > { %p2011_p3 = scmp.lt.s32.totalorder %s2616_s23, %s2009_s21 }
 0x327   : > { %561 = vrot.lane.b32.xlu1 %v553_v27, %s2107_s26  ;;  %823 = vrot.lane.b32.xlu0 %v553_v27, %s2108_s17 }
 0x32b   : > { %530 = vrot.lane.b32.xlu1 %v528_v26, %s2105_s22  ;;  %s2010_s22 = scalar_lea.vmem %s2009_s21, 256 }
 0x32c   : > { %p2012_p6 = scmp.lt.s32.totalorder %s2010_s22, %s2004_s3 }
 0x32e   : > { %p2013_p11 = por %p2012_p6, %p2011_p3 }
 0x330   : > { %p2014_p8 = pnand %p2013_p11, %p2007_p7 }
 0x391   : > { %v545_v28 = vpop.permute.xlu1 %544  ;;  %v551_v32 = vpop.permute.xlu0 %550 }
 0x392   : > { %v554_v29 = vpack.c.bf16 %v545_v28, %v545_v28  ;;  %v2513_v34 = vpack.c.bf16 %v551_v32, %v551_v32 }
 0x394   : > { %611 = vrot.lane.b32.xlu1 %v554_v29, %s2107_s26 }
 0x395   : > { %v548_v30 = vpop.permute.xlu1 %547  ;;  %v537_v42 = vpop.permute.xlu0 %536 }
 0x396   : > { %v2510_v31 = vpack.c.bf16 %v548_v30, %v548_v30  ;;  %v542_v49 = vpack.c.bf16 %v537_v42, %v537_v42 }
 0x398   : > { %660 = vrot.lane.b32.xlu1 %v2510_v31, %s2107_s26 }
 0x399   : > { %v562_v33 = vpop.permute.xlu1 %561  ;;  %v824_v46 = vpop.permute.xlu0 %823 }
 0x39a   : > { %v568_v35 = vsel %vm563_vm4, %v562_v33, 0  ;;  %v830_v50 = vsel %vm828_vm5, %v824_v46, 0 }
 0x39b   : > { %1535 = vmatpush3.bf16.xpose.msra.mxu1 %v568_v35 }
 0x39c   : > { %709 = vrot.lane.b32.xlu1 %v2513_v34, %s2107_s26  ;;  %1546 = vmatprep.subr.bf16.mxu1 %v2102_v8 }
 0x39d   : > { %v531_v37 = vpop.permute.xlu1 %530 }
 0x39e   : > { %v540_v43 = vpack.c.bf16 %v531_v37, %v531_v37 }
 0x3a0   : > { %533 = vrot.lane.b32.xlu1 %v528_v26, %s2106_s13 }
 0x3a2   : > { %1537 = vmatmul.mubr.msk.bf16.vlgmr.msra.gmra.mrb[0].mxu1 %vm563_vm4, %v539_v36 }
 0x3a3   : > { %1548 = vmatprep.mubr.msk.bf16.mxu1 %vm2103_vm1, %v2102_v8 }
 0x3a4   : > { %872 = vrot.lane.b32.xlu1 %v554_v29, %s2108_s17 }
 0x406   : > { %v612_v38 = vpop.permute.xlu1 %611 }
 0x407   : > { %v617_v39 = vsel %vm563_vm4, %v612_v38, 0 }
 0x408   : > { %1541 = vmatpush3.bf16.xpose.msra.mxu0 %v617_v39 }
 0x409   : > { %1552 = vmatprep.subr.bf16.mxu0 %v2102_v8 }
 0x40a   : > { %v661_v40 = vpop.permute.xlu1 %660 }
 0x40b   : > { %v666_v41 = vsel %vm563_vm4, %v661_v40, 0 }
 0x40c   : > { %1547 = vmatpush3.bf16.xpose.msra.mxu1 %v666_v41 }
 0x40d   : > { %1558 = vmatprep.subr.bf16.mxu1 %v2102_v8 }
 0x40e   : > { %v710_v44 = vpop.permute.xlu1 %709 }
 0x40f   : > { %v715_v45 = vsel %vm563_vm4, %v710_v44, 0  ;;  %1543 = vmatmul.mubr.msk.bf16.vlgmr.msra.gmra.mrb[4].mxu0 %vm563_vm4, %v540_v43 }
 0x410   : > { %1553 = vmatpush3.bf16.xpose.msra.mxu0 %v715_v45  ;;  %1554 = vmatprep.mubr.msk.bf16.mxu0 %vm2103_vm1, %v2102_v8 }
 0x411   : > { %1564 = vmatprep.subr.bf16.mxu0 %v2102_v8 }
 0x412   : > { %v534_v47 = vpop.permute.xlu1 %533 }
 0x413   : > { %v541_v48 = vpack.c.bf16 %v534_v47, %v534_v47 }
 0x415   : > { %1549 = vmatmul.mubr.msk.bf16.vlgmr.msra.gmra.mrb[4].mxu1 %vm563_vm4, %v541_v48 }
 0x416   : > { %1559 = vmatpush3.bf16.msra.mxu1 %v830_v50  ;;  %v873_v51 = vpop.permute.xlu1 %872  ;;  %1560 = vmatprep.mubr.msk.bf16.mxu1 %vm2103_vm1, %v2102_v8 }
 0x417   : > { %v878_v52 = vsel %vm828_vm5, %v873_v51, 0  ;;  %1555 = vmatmul.mubr.msk.bf16.vlgmr.msra.gmra.mrb[8].mxu0 %vm563_vm4, %v542_v49  ;;  %1570 = vmatprep.subr.bf16.mxu1 %v2102_v8 }
 0x418   : > { %1565 = vmatpush3.bf16.msra.mxu0 %v878_v52  ;;  %1566 = vmatprep.mubr.msk.bf16.mxu0 %vm2103_vm1, %v2102_v8 }
 0x419   : > { %1576 = vmatprep.subr.bf16.mxu0 %v2102_v8 }
 0x475   : > { %v604_v56 = vpop.f32.mrb[0].mxu1 }
 0x476   : > { %v759_v57 = vsel %vm2542_vm6, %v604_v56, -1e+09  ;;  %v1538_v58 = vpop.f32.mrb[1].mxu1 }
 0x477   : > { %v607_v59 = vpop.f32.mrb[2].mxu1  ;;  %v763_v60 = vsel %vm563_vm4, %v759_v57, -inf }
 0x478   : > { %764 = vmax.xlane.f32.xlu1 %v763_v60  ;;  %v1539_v61 = vpop.f32.mrb[3].mxu1 }
 0x4e2   : > { %v653_v62 = vpop.f32.mrb[4].mxu0 }
 0x4e3   : > { %v760_v63 = vsel %vm2542_vm6, %v653_v62, -1e+09  ;;  %v1544_v1 = vpop.f32.mrb[5].mxu0 }
 0x4e4   : > { %v656_v2 = vpop.f32.mrb[6].mxu0  ;;  %v766_v3 = vsel %vm563_vm4, %v760_v63, -inf  ;;  %v1736_v1 = vld [vmem:[#allocation8] sm:$0xff]  }
 0x4e5   : > { %767 = vmax.xlane.f32.xlu0 %v766_v3  ;;  %v1545_v4 = vpop.f32.mrb[7].mxu0 }
 0x4e8   : > { %v702_v5 = vpop.f32.mrb[4].mxu1 }
 0x4e9   : > { %v761_v6 = vsel %vm2542_vm6, %v702_v5, -1e+09  ;;  %v1550_v7 = vpop.f32.mrb[5].mxu1 }
 0x4ea   : > { %v705_v9 = vpop.f32.mrb[6].mxu1  ;;  %v751_v10 = vpop.f32.mrb[8].mxu0  ;;  %v769_v11 = vsel %vm563_vm4, %v761_v6, -inf }
 0x4eb   : > { %v762_v12 = vsel %vm2542_vm6, %v751_v10, -1e+09  ;;  %v1551_v13 = vpop.f32.mrb[7].mxu1  ;;  %770 = vmax.xlane.f32.xlu0 %v769_v11  ;;  %v1556_v14 = vpop.f32.mrb[9].mxu0 }
 0x4ec   : > { %v754_v15 = vpop.f32.mrb[10].mxu0  ;;  %v772_v16 = vsel %vm563_vm4, %v762_v12, -inf }
 0x4ed   : > { %773 = vmax.xlane.f32.xlu1 %v772_v16  ;;  %v1557_v17 = vpop.f32.mrb[11].mxu0 }
 0x4fe   : > { %920 = vrot.lane.b32.xlu1 %v2510_v31, %s2108_s17 }
 0x501   : > { %968 = vrot.lane.b32.xlu0 %v2513_v34, %s2108_s17 }
 0x505   : > { %v2562_v18 = vpop.xlane.xlu1 %764 }
 0x506   : > { %v787_v19 = vsub.f32 %v759_v57, %v2562_v18 }
 0x508   : > { %v791_v20 = vmul.f32 1.442695, %v787_v19 }
 0x50a   : > { %1748 = vpow2.f32 %v791_v20 }
 0x514   : > { %v1749_v21 = vpop.eup %1748 }
 0x515   : > { %v819_v22 = vpack.c.bf16 %v1749_v21, %v1749_v21  ;;  %v803_v39 = vsel %vm563_vm4, %v1749_v21, 0.0 }
 0x517   : > { %1561 = vmatmul.mubr.msk.bf16.vlgmr.msra.gmra.mrb[8].mxu1 %vm563_vm4, %v819_v22 }
 0x518   : > { %1572 = vmatprep.mubr.msk.bf16.mxu1 %vm2103_vm1, %v2102_v8 }
 0x572   : > { %v768_v23 = vpop.xlane.xlu0 %767 }
 0x573   : > { %v788_v24 = vsub.f32 %v760_v63, %v768_v23  ;;  %v776_v50 = vsub.f32 -inf, %v768_v23 }
 0x575   : > { %v793_v25 = vmul.f32 1.442695, %v788_v24  ;;  %v781_v51 = vmul.f32 1.442695, %v776_v50 }
 0x577   : > { %1750 = vpow2.f32 %v793_v25 }
 0x578   : > { %v771_v26 = vpop.xlane.xlu0 %770 }
 0x579   : > { %v789_v27 = vsub.f32 %v761_v6, %v771_v26  ;;  %v777_v52 = vsub.f32 -inf, %v771_v26  ;;  %v1737_v6 = vld [vmem:[#allocation8 + $0x8] sm:$0xff]  }
 0x57a   : > { %v774_v28 = vpop.xlane.xlu1 %773 }
 0x57b   : > { %v795_v29 = vmul.f32 1.442695, %v789_v27  ;;  %v790_v30 = vsub.f32 %v762_v12, %v774_v28  ;;  %v778_v53 = vsub.f32 -inf, %v774_v28  ;;  %v783_v54 = vmul.f32 1.442695, %v777_v52 }
 0x57c   : > { %v969_v35 = vpop.permute.xlu0 %968 }
 0x57d   : > { %v797_v31 = vmul.f32 1.442695, %v790_v30  ;;  %1752 = vpow2.f32 %v795_v29  ;;  %v974_v38 = vsel %vm828_vm5, %v969_v35, 0  ;;  %v785_v55 = vmul.f32 1.442695, %v778_v53 }
 0x57e   : > { %v921_v32 = vpop.permute.xlu1 %920  ;;  %v775_v30 = vsub.f32 -inf, %v2562_v18 }
 0x57f   : > { %v926_v33 = vsel %vm828_vm5, %v921_v32, 0  ;;  %1754 = vpow2.f32 %v797_v31 }
 0x580   : > { %1571 = vmatpush3.bf16.msra.mxu1 %v926_v33  ;;  %1756 = vpow2.f32 %v781_v51  ;;  %v779_v31 = vmul.f32 1.442695, %v775_v30 }
 0x581   : > { %1582 = vmatprep.subr.bf16.mxu1 %v2102_v8  ;;  %v1751_v34 = vpop.eup %1750  ;;  %1758 = vpow2.f32 %v783_v54 }
 0x582   : > { %v806_v36 = vsel %vm563_vm4, %v1751_v34, 0.0  ;;  %v820_v37 = vpack.c.bf16 %v1751_v34, %v1751_v34  ;;  %1760 = vpow2.f32 %v785_v55 }
 0x583   : > { %807 = vadd.xlane.f32.xlu1 %v806_v36 }
 0x584   : > { %1567 = vmatmul.mubr.msk.bf16.vlgmr.msra.gmra.mrb[12].mxu0 %vm563_vm4, %v820_v37 }
 0x585   : > { %1577 = vmatpush3.bf16.msra.mxu0 %v974_v38  ;;  %1578 = vmatprep.mubr.msk.bf16.mxu0 %vm2103_vm1, %v2102_v8 }
 0x586   : > { %1590 = vmatprep.subr.bf16.mxu0 %v2102_v8 }
 0x587   : > { %v1753_v40 = vpop.eup %1752  ;;  %804 = vadd.xlane.f32.xlu1 %v803_v39 }
 0x588   : > { %v809_v41 = vsel %vm563_vm4, %v1753_v40, 0.0  ;;  %v821_v42 = vpack.c.bf16 %v1753_v40, %v1753_v40 }
 0x589   : > { %v1755_v43 = vpop.eup %1754  ;;  %810 = vadd.xlane.f32.xlu0 %v809_v41 }
 0x58a   : > { %1573 = vmatmul.mubr.msk.bf16.vlgmr.msra.gmra.mrb[12].mxu1 %vm563_vm4, %v821_v42  ;;  %v822_v44 = vpack.c.bf16 %v1755_v43, %v1755_v43  ;;  %v812_v45 = vsel %vm563_vm4, %v1755_v43, 0.0  ;;  %v1757_v56 = vpop.eup %1756 }
 0x58b   : > { %1586 = vmatprep.mubr.msk.bf16.mxu1 %vm2103_vm1, %v2102_v8  ;;  %v800_v58 = vmul.f32 0.0, %v1757_v56  ;;  %v1759_v61 = vpop.eup %1758  ;;  %1583 = vmatpush3.bf16.msra.mxu1 %v1736_v1  ;;  %v1738_v56 = vld [vmem:[#allocation10] sm:$0xff]  }
 0x58c   : > { %1579 = vmatmul.mubr.msk.bf16.vlgmr.msra.gmra.mrb[16].mxu0 %vm563_vm4, %v822_v44  ;;  %v1761_v62 = vpop.eup %1760  ;;  %v801_v63 = vmul.f32 0.0, %v1759_v61  ;;  %1584 = vmatprep.subr.bf16.mxu1 %v2102_v8 }
 0x58d   : > { %813 = vadd.xlane.f32.xlu0 %v812_v45  ;;  %1594 = vmatprep.mubr.msk.bf16.mxu0 %vm2103_vm1, %v2102_v8  ;;  %v802_v4 = vmul.f32 0.0, %v1761_v62 }
 0x58e   : > { %1591 = vmatpush3.bf16.msra.mxu0 %v1738_v56 }
 0x58f   : > { %1585 = vmatpush3.bf16.msra.mxu1 %v1737_v6  ;;  %1592 = vmatprep.subr.bf16.mxu0 %v2102_v8 }
 0x590   : > { %1598 = vmatprep.subr.bf16.mxu1 %v2102_v8 }
 0x5ea   : > { %v2585_v46 = vpop.f32.mrb[8].mxu1 }
 0x5eb   : > { %v1562_v47 = vpop.f32.mrb[9].mxu1 }
 0x5ec   : > { %v869_v48 = vpop.f32.mrb[10].mxu1 }
 0x5ed   : > { %v1563_v49 = vpop.f32.mrb[11].mxu1 }
 0x610   : > { %v808_v57 = vpop.xlane.xlu1 %807 }
 0x611   : > { %v816_v60 = vadd.f32 %v808_v57, %v800_v58  ;;  %v1739_v57 = vld [vmem:[#allocation10 + $0x8] sm:$0xff]  }
 0x612   : > { %1593 = vmatpush3.bf16.msra.mxu0 %v1739_v57 }
 0x613   : > { %1762 = vrcp.f32 %v816_v60 }
 0x614   : > { %v805_v33 = vpop.xlane.xlu1 %804 }
 0x616   : > { %v811_v59 = vpop.xlane.xlu0 %810 }
 0x617   : > { %v817_v3 = vadd.f32 %v811_v59, %v801_v63 }
 0x619   : > { %1764 = vrcp.f32 %v817_v3 }
 0x61a   : > { %v814_v2 = vpop.xlane.xlu0 %813 }
 0x61b   : > { %v818_v5 = vadd.f32 %v814_v2, %v802_v4 }
 0x61d   : > { %1766 = vrcp.f32 %v818_v5  ;;  %v1763_v11 = vpop.eup %1762 }
 0x61e   : > { %1768 = vpow2.f32 %v779_v31 }
 0x623   : > { %v1765_v19 = vpop.eup %1764 }
 0x627   : > { %v1767_v26 = vpop.eup %1766 }
 0x628   : > { %v1769_v32 = vpop.eup %1768 }
 0x629   : > { %v799_v34 = vmul.f32 0.0, %v1769_v32 }
 0x62b   : > { %v815_v35 = vadd.f32 %v805_v33, %v799_v34  ;;  %v1016_v37 = vadd.f32 %v2585_v46, %v799_v34 }
 0x62d   : > { %1770 = vrcp.f32 %v815_v35 }
 0x637   : > { %v1771_v36 = vpop.eup %1770 }
 0x638   : > { %v1024_v40 = vmul.f32 %v1771_v36, %v1016_v37 }
 0x657   : > { %v914_v7 = vpop.f32.mrb[12].mxu0 }
 0x658   : > { %v1017_v9 = vadd.f32 %v914_v7, %v800_v58  ;;  %v1568_v10 = vpop.f32.mrb[13].mxu0  ;;  %v1741_v58 = vld [vmem:[#allocation13 + $0x8] sm:$0xff]  }
 0x659   : > { %v917_v12 = vpop.f32.mrb[14].mxu0  ;;  %v1743_v10 = vld [vmem:[#allocation13 + $0x18] sm:$0xff]  }
 0x65a   : > { %v1025_v13 = vmul.f32 %v1763_v11, %v1017_v9  ;;  %v1569_v14 = vpop.f32.mrb[15].mxu0  ;;  %v1742_v9 = vld [vmem:[#allocation13 + $0x10] sm:$0xff]   ;;  %v1482_v11 = vld [vmem:[#allocation11] ss:$0 sm:$0xff] }
 0x65c   : > { %1029 = vrot.lane.b32.xlu0 %v1025_v13, %s2109_s2 }
 0x65d   : > { %v962_v15 = vpop.f32.mrb[12].mxu1 }
 0x65e   : > { %v1018_v16 = vadd.f32 %v962_v15, %v801_v63  ;;  %v1574_v17 = vpop.f32.mrb[13].mxu1 }
 0x65f   : > { %v965_v20 = vpop.f32.mrb[14].mxu1  ;;  %v1010_v21 = vpop.f32.mrb[16].mxu0 }
 0x660   : > { %v1026_v22 = vmul.f32 %v1765_v19, %v1018_v16  ;;  %v1019_v23 = vadd.f32 %v1010_v21, %v802_v4  ;;  %v1575_v24 = vpop.f32.mrb[15].mxu1  ;;  %v1580_v25 = vpop.f32.mrb[17].mxu0  ;;  %v1486_v20 = vld [vmem:[#allocation14] ss:$0 sm:$0xff] }
 0x661   : > { %v1013_v27 = vpop.f32.mrb[18].mxu0 }
 0x662   : > { %v1027_v28 = vmul.f32 %v1767_v26, %v1019_v23  ;;  %1033 = vrot.lane.b32.xlu1 %v1026_v22, %s2110_s25  ;;  %v1581_v29 = vpop.f32.mrb[19].mxu0 }
 0x666   : > { %1037 = vrot.lane.b32.xlu1 %v1027_v28, %s2111_s20 }
 0x6ce   : > { %v1030_v38 = vpop.permute.xlu0 %1029 }
 0x6cf   : > { %v1040_v41 = vsel %vm563_vm4, %v1024_v40, %v1030_v38 }
 0x6d4   : > { %v1034_v39 = vpop.permute.xlu1 %1033 }
 0x6d5   : > { %v1042_v42 = vsel %vm1041_vm7, %v1040_v41, %v1034_v39 }
 0x6d8   : > { %v1038_v43 = vpop.permute.xlu1 %1037 }
 0x6d9   : > { %v1044_v18 = vsel %vm1043_vm8, %v1042_v42, %v1038_v43 }
 0x6da   : > { %v1045_v44 = vpack.c.bf16 %v1044_v18, %v1044_v18 }
 0x6dc   : > { %1587 = vmatmul.mubr.msk.bf16.vlgmr.msra.gmra.mrb[16].mxu1 %vm443_vm0, %v1045_v44 }
 0x6dd   : > { %1606 = vmatprep.mubr.msk.bf16.mxu1 %vm2103_vm1, %v2102_v8 }
 0x7af   : > { %v1099_v45 = vpop.f32.mrb[16].mxu1 }
 0x7b0   : > { %v2596_v47 = vadd.f32 %v1099_v45, %v2492_v0  ;;  %v1588_v46 = vpop.f32.mrb[17].mxu1  ;;  %v1740_v0 = vld [vmem:[#allocation13] sm:$0xff]  }
 0x7b1   : > { %v1102_v48 = vpop.f32.mrb[18].mxu1  ;;  %1599 = vmatpush3.bf16.msra.mxu1 %v1740_v0 }
 0x7b2   : > { %v1589_v49 = vpop.f32.mrb[19].mxu1  ;;  %v1106_v50 = vsel %vm443_vm0, %v2596_v47, 0.0  ;;  %1600 = vmatprep.subr.bf16.mxu1 %v2102_v8 }
 0x7b3   : > { %1107 = vadd.xlane.f32.xlu0 %v1106_v50 }
 0x7b5   : > { %1601 = vmatpush3.bf16.msra.mxu1 %v1741_v58 }
 0x7b6   : > { %1602 = vmatprep.subr.bf16.mxu1 %v2102_v8 }
 0x7b9   : > { %1603 = vmatpush3.bf16.msra.mxu1 %v1742_v9 }
 0x7ba   : > { %1604 = vmatprep.subr.bf16.mxu1 %v2102_v8 }
 0x7bd   : > { %1605 = vmatpush3.bf16.msra.mxu1 %v1743_v10 }
 0x840   : > { %v1108_v51 = vpop.xlane.xlu0 %1107 }
 0x841   : > { %v1109_v52 = vmul.f32 0.03125, %v1108_v51 }
 0x843   : > { %v1110_v53 = vsub.f32 %v2596_v47, %v1109_v52 }
 0x845   : > { %v1111_v54 = vmul.f32 %v1110_v53, %v1110_v53 }
 0x847   : > { %v1112_v55 = vsel %vm443_vm0, %v1111_v54, 0.0 }
 0x848   : > { %1113 = vadd.xlane.f32.xlu1 %v1112_v55 }
 0x8d5   : > { %v1114_v59 = vpop.xlane.xlu1 %1113 }
 0x8d6   : > { %v1115_v60 = vmul.f32 0.032258064, %v1114_v59 }
 0x8d8   : > { %1772 = vrsqrt.f32 %v1115_v60  ;;  %vm1118_vm9 = vcmp.eq.f32.partialorder %v1115_v60, inf  ;;  %v1121_v63 = vand.u32 2147483648, %v1115_v60  ;;  %vm1120_vm10 = vcmp.eq.f32.partialorder %v1115_v60, 0.0 }
 0x8e2   : > { %v1773_v61 = vpop.eup %1772 }
 0x8e3   : > { %v1117_v62 = vmul.f32 %v1773_v61, %v1115_v60 }
 0x8e5   : > { %v1119_v1 = vsel %vm1118_vm9, %v1115_v60, %v1117_v62 }
 0x8e6   : > { %v1122_v2 = vsel %vm1120_vm10, %v1121_v63, %v1119_v1 }
 0x8e7   : > { %v1123_v3 = vadd.f32 1e-06, %v1122_v2 }
 0x8e9   : > { %1774 = vrcp.f32 %v1123_v3 }
 0x8f3   : > { %v1775_v4 = vpop.eup %1774 }
 0x8f4   : > { %v1125_v5 = vmul.f32 %v1775_v4, %v1110_v53 }
 0x8f6   : > { %v1126_v6 = vadd.f32 1.0, %v1125_v5 }
 0x8f8   : > { %v1127_v7 = vpack.c.bf16 %v1126_v6, %v1126_v6 }
 0x8fa   : > { %1595 = vmatmul.mubr.msk.bf16.vlgmr.msra.gmra.mrb[20].mxu0 %vm443_vm0, %v1127_v7 }
 0x9cd   : > { %v1188_v12 = vpop.f32.mrb[20].mxu0 }
 0x9ce   : > { %v1189_v13 = vadd.f32 %v1482_v11, %v1188_v12  ;;  %v1596_v14 = vpop.f32.mrb[21].mxu0 }
 0x9cf   : > { %v1191_v15 = vpop.f32.mrb[22].mxu0 }
 0x9d0   : > { %v1194_v16 = vmax.f32 %v1189_v13, 0.0  ;;  %v1597_v17 = vpop.f32.mrb[23].mxu0 }
 0x9d2   : > { %v1195_v19 = vpack.c.bf16 %v1194_v16, %v1194_v16 }
 0x9d4   : > { %1607 = vmatmul.mubr.msk.bf16.vlgmr.msra.gmra.mrb[20].mxu1 %vm1235_vm11, %v1195_v19 }
 0xaa7   : > { %v1273_v21 = vpop.f32.mrb[20].mxu1 }
 0xaa8   : > { %v1274_v8 = vadd.f32 %v1486_v20, %v1273_v21  ;;  %v1608_v22 = vpop.f32.mrb[21].mxu1 }
 0xaa9   : > { %v1276_v23 = vpop.f32.mrb[22].mxu1 }
 0xaaa   : > { %v1279_v24 = vadd.f32 %v1274_v8, %v2596_v47  ;;  %v1609_v25 = vpop.f32.mrb[23].mxu1 }
 0xaac   : > { %1280 = vst.msk [vmem:[%s440_s18] sm:$0xff] %vm443_vm0, %v1279_v24 }
 0xaad   : > { %2017 = shalt.err (!%p2014_p8)
}
 0xaae   : > { %s2018_s4 = scalar_lea.hbm %s2614_s9, 128  ;;  %s2022_s17 = scalar_lea.hbm %s2667_s8, 256 }
 0xaaf   : > { %p2019_p9 = scmp.ne.s32.totalorder %s2614_s9, %s2018_s4  ;;  %p2023_p13 = scmp.lt.u32.totalorder %s2614_s9, %s2667_s8 }
 0xab0   : > { %p2024_p0 = scmp.lt.u32.totalorder %s2022_s17, %s2018_s4  ;;  %p2026_p4 = scmp.lt.u32.totalorder %s2018_s4, %s2614_s9 }
 0xab1   : > { %p2020_p12 = pnand %p2019_p9, %p2705_p10 }
 0xab2   : > { %p2025_p2 = por %p2024_p0, %p2023_p13 }
 0xab3   : > { %p2021_p1 = pneg %p2020_p12 }
 0xab4   : > { %p2027_p5 = por %p2026_p4, %p2025_p2 }
 0xab6   : > { %p2028_p7 = pnand %p2027_p5, %p2021_p1 }
 0xab8   : > { %2031 = shalt.err (!%p2028_p7)
}
 0xab9   : > { %1638 = dma.vmem_to_hbm [thread:$0]  (%p2705_p10), %s2616_s23, 128, %s2614_s9, %s1282_s11  }
 0xaba PF: > { %s1307_s20 = sand.u32 1, %s2078_s27   ;;  %p2706_p3 = scmp.ne.s32.totalorder %s2689_s10, 0 }
 0xabb   : > { %p2707_p6 = scmp.ge.s32.totalorder %s2090_s30, 2  ;;  %s1308_s19 = scalar_lea.sflag [#allocation4], %s1307_s20 }
 0xabd   : > { %p1667_p11 = pnand %p2707_p6, %p2706_p3 }
 0xabf   : > { %2073 = dma.done.wait (!%p1667_p11), %s1308_s19, 128  }
 0xac0   : > { %2075 = vsyncadd (!%p1667_p11), %s1308_s19, 4294967168  ;;  %p27_p8 = scmp.ge.s32.totalorder %s2347_s15, 4   ;;  %s2708_s27 = smov %s2082_s28 }
 0xac1   : > { %s2709_s28 = smov %s2086_s29  ;;  %s2710_s29 = smov %s2358_s24 }
 0xac2   : > { %s2711_s30 = smov %s2347_s15  ;;  %29 = sbr.rel (!%p27_p8) target bundleno = 15 (0xf), region = 134 }
 0xac9   :  { %1313 = vsyncpa [#allocation3], 1 }
 0xaca   :  { %1315 = vsyncpa [#allocation3 + $0x1], 1 }
 0xacb   :  { %1316 = vsyncpa [#allocation6], 1 }
 0xacc   :  { %1318 = vsyncpa [#allocation6 + $0x1], 1 }
 0xacd   :  { %1319 = vsyncpa [#allocation9], 1 }
 0xace   :  { %1320 = vsyncpa [#allocation12], 1 }
 0xacf   :  { %1321 = vsyncpa [#allocation15], 1 }
 0xad0   :  { %1322 = vsyncpa [#allocation4], 1 }
 0xad1   :  { %1324 = vsyncpa [#allocation4 + $0x1], 1 }

</bundles_post_ra>
